<compile_context>
chip_gen: v7x
topology: tpu7x:2x2x1
jax: 0.10.0
libtpu: 0.0.40
codegen_flags: <defaults>
</compile_context>

<pallas_src>
import jax
import jax.numpy as jnp
from jax.experimental import pallas as pl
from jax.experimental.pallas import tpu as pltpu


# ----------------------------- model configuration --------------------------

IN_CHANNELS = 2
IN_RESOLUTION = 16
BACKBONE_ARCH = [[3, 8, 2], [3, 16, 2]]   # [kernel, out_channels, stride]
SCORE_THRESHOLD = 0.5
HEAD_HIDDEN = 16


# ----------------------------- Pallas kernel --------------------------------

def _cvseanet_kernel(inc_ref, x_ref,
                     sel1_ref, w1_ref, inc1_ref, b1_ref,
                     sel2_ref, w2_ref, b2_ref,
                     sel3_ref, w3_ref, b3_ref,
                     wh_ref, bh_ref,
                     o_ref):
    """Entire CVSeaNet forward for one image (grid axis = batch).

    Activations are kept as 2-D (H, Cout*W) f32 arrays the whole way through:
      conv1 out: (8, 64)   conv2 out: (4, 64)   head conv out: (4, 64)   heads out: (4, 12)
    """
    f32 = jnp.float32
    inc = inc_ref[pl.program_id(0)]                       # scalar from SMEM

    # ---- conv1: 3x3, stride 2, pad 1, Cin = 2 image chans + 1 inc chan, Cout = 8, ReLU ----
    # early 'cat' data fusion: the inc-angle channel is constant over the image, so its whole
    # contribution is inc * inc1 (precomputed (8, 64) matrix).
    acc = inc * inc1_ref[...] + b1_ref[...]               # (8, 64) via broadcast
    for kh in range(3):
        for c in range(IN_CHANNELS):
            rows = jnp.dot(sel1_ref[kh], x_ref[c], preferred_element_type=f32)     # (8, 16)
            acc = acc + jnp.dot(rows, w1_ref[kh, c], preferred_element_type=f32)   # (8, 64)
    a1 = jnp.maximum(acc, 0.0)                            # (8, 8*8)  == (H, Cout*W)

    # ---- conv2: 3x3, stride 2, pad 1, 8 -> 16 channels, ReLU ----
    acc = b2_ref[...]
    for kh in range(3):
        rows = jnp.dot(sel2_ref[kh], a1, preferred_element_type=f32)               # (4, 64)
        acc = acc + jnp.dot(rows, w2_ref[kh], preferred_element_type=f32)          # (4, 64)
    a2 = jnp.maximum(acc, 0.0)                            # (4, 16*4)

    # ---- head shared conv: 3x3, stride 1, pad 1, 16 -> 16 channels, ReLU ----
    acc = b3_ref[...]
    for kh in range(3):
        rows = jnp.dot(sel3_ref[kh], a2, preferred_element_type=f32)               # (4, 64)
        acc = acc + jnp.dot(rows, w3_ref[kh], preferred_element_type=f32)          # (4, 64)
    a3 = jnp.maximum(acc, 0.0)                            # (4, 16*4)

    # ---- fused 1x1 heads: columns [0:4]=heatmap (sigmoid), [4:12]=offsets (linear) ----
    z = jnp.dot(a3, wh_ref[...], preferred_element_type=f32) + bh_ref[...]         # (4, 12)
    is_hm = jax.lax.broadcasted_iota(jnp.int32, z.shape, 1) < 4
    o_ref[...] = jnp.where(is_hm, jax.nn.sigmoid(z), z)


# ----------------------------- parameter init / packing ---------------------

def _conv_init(key, kh, kw, cin, cout):
    wkey, bkey = jax.random.split(key)
    fan_in = kh * kw * cin
    w = jax.random.normal(wkey, (kh, kw, cin, cout), jnp.float32) / jnp.sqrt(fan_in)
    b = 0.01 * jax.random.normal(bkey, (cout,), jnp.float32)
    return w, b


def init_params(key):
    """Standard conv weights (HWIO) matching the synthesized PyTorch architecture."""
    cin = IN_CHANNELS + 1      # early 'cat' data fusion adds the inc-angle channel
    keys = jax.random.split(key, 5)
    params = {}
    k1, c1, _ = BACKBONE_ARCH[0]
    params["b1_w"], params["b1_b"] = _conv_init(keys[0], k1, k1, cin, c1)
    k2, c2, _ = BACKBONE_ARCH[1]
    params["b2_w"], params["b2_b"] = _conv_init(keys[1], k2, k2, c1, c2)
    params["h_w"], params["h_b"] = _conv_init(keys[2], 3, 3, c2, HEAD_HIDDEN)
    params["hm_w"], params["hm_b"] = _conv_init(keys[3], 1, 1, HEAD_HIDDEN, 1)
    params["off_w"], params["off_b"] = _conv_init(keys[4], 1, 1, HEAD_HIDDEN, 2)
    return params


def _row_select_matrices(h_in, h_out, stride, pad, ksize):
    """sel[kh, i, r] = 1 iff r == stride*i + kh - pad (rows in the zero pad simply drop out)."""
    i_idx = jnp.arange(h_out)[:, None]
    r_idx = jnp.arange(h_in)[None, :]
    return jnp.stack(
        [(r_idx == stride * i_idx + kh - pad).astype(jnp.float32) for kh in range(ksize)],
        axis=0)                                                    # (ksize, h_out, h_in)


def _col_weight_matrices(w, w_in, stride, pad):
    """Toeplitz-along-width expansion of conv weights.

    w: (KH, KW, Cin, Cout)  ->  B: (KH, Cin*w_in, Cout*w_out) with
    B[kh, c*w_in + x, o*w_out + j] = w[kh, x - stride*j + pad, c, o] (0 outside the kernel window),
    so (rows_kh @ B[kh]) performs both the width sliding window (incl. stride + zero pad) and the
    input-channel contraction.
    """
    KH, KW, Cin, Cout = w.shape
    w_out = (w_in + 2 * pad - KW) // stride + 1
    x_idx = jnp.arange(w_in)[:, None]
    j_idx = jnp.arange(w_out)[None, :]
    kw_of = x_idx - (stride * j_idx - pad)                         # (w_in, w_out)
    valid = (kw_of >= 0) & (kw_of < KW)
    kw_cl = jnp.clip(kw_of, 0, KW - 1)
    mats = []
    for kh in range(KH):
        taps = w[kh][kw_cl]                                        # (w_in, w_out, Cin, Cout)
        taps = jnp.where(valid[:, :, None, None], taps, 0.0)
        mats.append(jnp.transpose(taps, (2, 0, 3, 1)).reshape(Cin * w_in, Cout * w_out))
    return jnp.stack(mats, axis=0), w_out


def pack_params(params):
    """One-time weight preprocessing (off the hot path): build the matmul operands the kernel uses."""
    p = {}

    # conv1: 16x16 input, stride 2, pad 1, Cin = IN_CHANNELS + 1 (inc channel is the last one)
    sel1 = _row_select_matrices(16, 8, 2, 1, 3)                    # (3, 8, 16)
    B1, _ = _col_weight_matrices(params["b1_w"], 16, 2, 1)         # (3, 3*16, 8*8)
    B1 = B1.reshape(3, IN_CHANNELS + 1, 16, 64)
    p["sel1"] = sel1
    p["w1"] = B1[:, :IN_CHANNELS]                                  # (3, 2, 16, 64) image channels
    # inc channel is spatially constant -> fold sum_kh (Sel @ 1) @ B1_inc into one (8, 64) matrix
    ones = jnp.ones((16, 16), jnp.float32)
    p["inc1"] = sum(jnp.dot(jnp.dot(sel1[kh], ones), B1[kh, IN_CHANNELS]) for kh in range(3))
    p["b1"] = jnp.repeat(params["b1_b"], 8)[None, :]               # (1, 64) index = o*8 + j

    # conv2: 8x8 input, stride 2, pad 1, 8 -> 16 channels
    p["sel2"] = _row_select_matrices(8, 4, 2, 1, 3)                # (3, 4, 8)
    p["w2"], _ = _col_weight_matrices(params["b2_w"], 8, 2, 1)     # (3, 64, 64)
    p["b2"] = jnp.repeat(params["b2_b"], 4)[None, :]               # (1, 64)

    # head shared conv: 4x4 input, stride 1, pad 1, 16 -> 16 channels
    p["sel3"] = _row_select_matrices(4, 4, 1, 1, 3)                # (3, 4, 4)
    p["w3"], _ = _col_weight_matrices(params["h_w"], 4, 1, 1)      # (3, 64, 64)
    p["b3"] = jnp.repeat(params["h_b"], 4)[None, :]                # (1, 64)

    # fused 1x1 heads: output channel order = [heatmap, offset_x, offset_y]
    whead = jnp.concatenate([params["hm_w"].reshape(HEAD_HIDDEN, 1),
                             params["off_w"].reshape(HEAD_HIDDEN, 2)], axis=1)   # (16, 3)
    eye = jnp.eye(4, dtype=jnp.float32)
    p["wh"] = jnp.einsum("co,wj->cwoj", whead, eye).reshape(HEAD_HIDDEN * 4, 3 * 4)  # (64, 12)
    bh = jnp.concatenate([params["hm_b"], params["off_b"]])        # (3,)
    p["bh"] = jnp.repeat(bh, 4)[None, :]                           # (1, 12)
    return p


# --------------------------------- forward ----------------------------------

def cvseanet_forward(packed, x_nchw, inc_angle):
    """x_nchw: (N, C, H, W) float32; inc_angle: (N,) float32 (early 'cat' data fusion input)."""
    N = x_nchw.shape[0]

    z = pl.pallas_call(
        _cvseanet_kernel,
        out_shape=jax.ShapeDtypeStruct((N, 4, 12), jnp.float32),
        grid=(N,),
        in_specs=[
            pl.BlockSpec(memory_space=pltpu.MemorySpace.SMEM),                    # inc_angle (N,)
            pl.BlockSpec((None, IN_CHANNELS, 16, 16), lambda i: (i, 0, 0, 0)),    # x, per image
            pl.BlockSpec((3, 8, 16), lambda i: (0, 0, 0)),                        # sel1
            pl.BlockSpec((3, IN_CHANNELS, 16, 64), lambda i: (0, 0, 0, 0)),       # w1
            pl.BlockSpec((8, 64), lambda i: (0, 0)),                              # inc1
            pl.BlockSpec((1, 64), lambda i: (0, 0)),                              # b1
            pl.BlockSpec((3, 4, 8), lambda i: (0, 0, 0)),                         # sel2
            pl.BlockSpec((3, 64, 64), lambda i: (0, 0, 0)),                       # w2
            pl.BlockSpec((1, 64), lambda i: (0, 0)),                              # b2
            pl.BlockSpec((3, 4, 4), lambda i: (0, 0, 0)),                         # sel3
            pl.BlockSpec((3, 64, 64), lambda i: (0, 0, 0)),                       # w3
            pl.BlockSpec((1, 64), lambda i: (0, 0)),                              # b3
            pl.BlockSpec((64, 12), lambda i: (0, 0)),                             # wh
            pl.BlockSpec((1, 12), lambda i: (0, 0)),                              # bh
        ],
        out_specs=pl.BlockSpec((None, 4, 12), lambda i: (i, 0, 0)),
        compiler_params=pltpu.CompilerParams(dimension_semantics=("parallel",)),
    )(inc_angle, x_nchw,
      packed["sel1"], packed["w1"], packed["inc1"], packed["b1"],
      packed["sel2"], packed["w2"], packed["b2"],
      packed["sel3"], packed["w3"], packed["b3"],
      packed["wh"], packed["bh"])

    # z: (N, H=4, [hm j0..3 | off_x j0..3 | off_y j0..3]) -> PyTorch NCHW outputs
    hm = z[:, :, 0:4][:, None, :, :]                               # (N, 1, 4, 4)
    off = jnp.stack([z[:, :, 4:8], z[:, :, 8:12]], axis=1)         # (N, 2, 4, 4)

    return {
        "Keypoints heatmap": hm,
        "Offset heatmap": off,
        "Scale Parameter": IN_RESOLUTION / hm.shape[-1],
    }


def check_nan(x):
    if bool(jnp.isnan(x).any()):
        raise ValueError("There is a nan")


# --------------------------------- driver -----------------------------------

if __name__ == "__main__":
    key = jax.random.PRNGKey(0)
    kx, ka, kp = jax.random.split(key, 3)

    x = jax.random.normal(kx, (2, IN_CHANNELS, IN_RESOLUTION, IN_RESOLUTION), jnp.float32)
    inc_angle = jax.random.uniform(ka, (2,), jnp.float32, minval=30.0, maxval=45.0)

    params = init_params(kp)
    packed = pack_params(params)          # one-time weight preprocessing (off the hot path)

    out = cvseanet_forward(packed, x, inc_angle)
    hm = jax.block_until_ready(out["Keypoints heatmap"])
    off = jax.block_until_ready(out["Offset heatmap"])

    check_nan(hm)
    check_nan(off)
    assert hm.shape == (2, 1, 4, 4), hm.shape
    assert off.shape == (2, 2, 4, 4), off.shape
    assert out["Scale Parameter"] == 4.0

    print("KERNEL_OK")
</pallas_src>

<mosaic_0001>
module attributes {stable_mosaic.version = 11 : i64} {
  func.func @_cvseanet_kernel(%arg0: i32, %arg1: memref<2xf32, #tpu.memory_space<smem>>, %arg2: memref<1x2x16x16xf32, #tpu.memory_space<vmem>>, %arg3: memref<3x8x16xf32, #tpu.memory_space<vmem>>, %arg4: memref<3x2x16x64xf32, #tpu.memory_space<vmem>>, %arg5: memref<8x64xf32, #tpu.memory_space<vmem>>, %arg6: memref<1x64xf32, #tpu.memory_space<vmem>>, %arg7: memref<3x4x8xf32, #tpu.memory_space<vmem>>, %arg8: memref<3x64x64xf32, #tpu.memory_space<vmem>>, %arg9: memref<1x64xf32, #tpu.memory_space<vmem>>, %arg10: memref<3x4x4xf32, #tpu.memory_space<vmem>>, %arg11: memref<3x64x64xf32, #tpu.memory_space<vmem>>, %arg12: memref<1x64xf32, #tpu.memory_space<vmem>>, %arg13: memref<64x12xf32, #tpu.memory_space<vmem>>, %arg14: memref<1x12xf32, #tpu.memory_space<vmem>>, %arg15: memref<1x4x12xf32, #tpu.memory_space<vmem>>) attributes {dimension_semantics = [#tpu.dimension_semantics<parallel>], iteration_bounds = array<i64: 2>, scalar_prefetch = 0 : i64, scratch_operands = 0 : i64, tpu.core_type = #tpu.core_type<tc>, window_params = [{transform_indices = @transform_0, window_bounds = array<i64: 2>}, {transform_indices = @transform_1, window_bounds = array<i64: 1, 2, 16, 16>}, {pipeline_mode = #tpu.pipeline_mode<synchronous>, transform_indices = @transform_2, window_bounds = array<i64: 3, 8, 16>}, {pipeline_mode = #tpu.pipeline_mode<synchronous>, transform_indices = @transform_3, window_bounds = array<i64: 3, 2, 16, 64>}, {pipeline_mode = #tpu.pipeline_mode<synchronous>, transform_indices = @transform_4, window_bounds = array<i64: 8, 64>}, {pipeline_mode = #tpu.pipeline_mode<synchronous>, transform_indices = @transform_5, window_bounds = array<i64: 1, 64>}, {pipeline_mode = #tpu.pipeline_mode<synchronous>, transform_indices = @transform_6, window_bounds = array<i64: 3, 4, 8>}, {pipeline_mode = #tpu.pipeline_mode<synchronous>, transform_indices = @transform_7, window_bounds = array<i64: 3, 64, 64>}, {pipeline_mode = #tpu.pipeline_mode<synchronous>, transform_indices = @transform_8, window_bounds = array<i64: 1, 64>}, {pipeline_mode = #tpu.pipeline_mode<synchronous>, transform_indices = @transform_9, window_bounds = array<i64: 3, 4, 4>}, {pipeline_mode = #tpu.pipeline_mode<synchronous>, transform_indices = @transform_10, window_bounds = array<i64: 3, 64, 64>}, {pipeline_mode = #tpu.pipeline_mode<synchronous>, transform_indices = @transform_11, window_bounds = array<i64: 1, 64>}, {pipeline_mode = #tpu.pipeline_mode<synchronous>, transform_indices = @transform_12, window_bounds = array<i64: 64, 12>}, {pipeline_mode = #tpu.pipeline_mode<synchronous>, transform_indices = @transform_13, window_bounds = array<i64: 1, 12>}, {transform_indices = @transform_14, window_bounds = array<i64: 1, 4, 12>}]} {
    %0 = arith.index_cast %arg0 : i32 to index
    %1 = memref.load %arg1[%0] : memref<2xf32, #tpu.memory_space<smem>>
    %c0 = arith.constant 0 : index
    %c0_0 = arith.constant 0 : index
    %2 = vector.load %arg5[%c0, %c0_0] : memref<8x64xf32, #tpu.memory_space<vmem>>, vector<8x64xf32>
    %3 = vector.broadcast %1 : f32 to vector<8x64xf32>
    %4 = arith.mulf %3, %2 : vector<8x64xf32>
    %c0_1 = arith.constant 0 : index
    %c0_2 = arith.constant 0 : index
    %5 = vector.load %arg6[%c0_1, %c0_2] : memref<1x64xf32, #tpu.memory_space<vmem>>, vector<1x64xf32>
    %6 = vector.broadcast %5 : vector<1x64xf32> to vector<8x64xf32>
    %7 = arith.addf %4, %6 : vector<8x64xf32>
    %c0_3 = arith.constant 0 : index
    %c0_4 = arith.constant 0 : index
    %c0_5 = arith.constant 0 : index
    %8 = vector.load %arg3[%c0_3, %c0_4, %c0_5] : memref<3x8x16xf32, #tpu.memory_space<vmem>>, vector<1x8x16xf32>
    %9 = vector.shape_cast %8 : vector<1x8x16xf32> to vector<8x16xf32>
    %c0_6 = arith.constant 0 : index
    %c0_7 = arith.constant 0 : index
    %c0_8 = arith.constant 0 : index
    %c0_9 = arith.constant 0 : index
    %10 = vector.load %arg2[%c0_6, %c0_7, %c0_8, %c0_9] : memref<1x2x16x16xf32, #tpu.memory_space<vmem>>, vector<1x1x16x16xf32>
    %11 = vector.shape_cast %10 : vector<1x1x16x16xf32> to vector<16x16xf32>
    %cst = arith.constant dense<0.000000e+00> : vector<8x16xf32>
    %12 = tpu.matmul %9, %11, %cst {dimension_numbers = #tpu.dot_dimension_numbers<[1], [0], [0], [1], [0, 0, 1, 1], [], []>} : vector<8x16xf32>, vector<16x16xf32>, vector<8x16xf32> -> vector<8x16xf32>
    %c0_10 = arith.constant 0 : index
    %c0_11 = arith.constant 0 : index
    %c0_12 = arith.constant 0 : index
    %c0_13 = arith.constant 0 : index
    %13 = vector.load %arg4[%c0_10, %c0_11, %c0_12, %c0_13] : memref<3x2x16x64xf32, #tpu.memory_space<vmem>>, vector<1x1x16x64xf32>
    %14 = vector.shape_cast %13 : vector<1x1x16x64xf32> to vector<16x64xf32>
    %cst_14 = arith.constant dense<0.000000e+00> : vector<8x64xf32>
    %15 = tpu.matmul %12, %14, %cst_14 {dimension_numbers = #tpu.dot_dimension_numbers<[1], [0], [0], [1], [0, 0, 1, 1], [], []>} : vector<8x16xf32>, vector<16x64xf32>, vector<8x64xf32> -> vector<8x64xf32>
    %16 = arith.addf %7, %15 : vector<8x64xf32>
    %c0_15 = arith.constant 0 : index
    %c0_16 = arith.constant 0 : index
    %c0_17 = arith.constant 0 : index
    %17 = vector.load %arg3[%c0_15, %c0_16, %c0_17] : memref<3x8x16xf32, #tpu.memory_space<vmem>>, vector<1x8x16xf32>
    %18 = vector.shape_cast %17 : vector<1x8x16xf32> to vector<8x16xf32>
    %c0_18 = arith.constant 0 : index
    %c1 = arith.constant 1 : index
    %c0_19 = arith.constant 0 : index
    %c0_20 = arith.constant 0 : index
    %19 = vector.load %arg2[%c0_18, %c1, %c0_19, %c0_20] : memref<1x2x16x16xf32, #tpu.memory_space<vmem>>, vector<1x1x16x16xf32>
    %20 = vector.shape_cast %19 : vector<1x1x16x16xf32> to vector<16x16xf32>
    %cst_21 = arith.constant dense<0.000000e+00> : vector<8x16xf32>
    %21 = tpu.matmul %18, %20, %cst_21 {dimension_numbers = #tpu.dot_dimension_numbers<[1], [0], [0], [1], [0, 0, 1, 1], [], []>} : vector<8x16xf32>, vector<16x16xf32>, vector<8x16xf32> -> vector<8x16xf32>
    %c0_22 = arith.constant 0 : index
    %c1_23 = arith.constant 1 : index
    %c0_24 = arith.constant 0 : index
    %c0_25 = arith.constant 0 : index
    %22 = vector.load %arg4[%c0_22, %c1_23, %c0_24, %c0_25] : memref<3x2x16x64xf32, #tpu.memory_space<vmem>>, vector<1x1x16x64xf32>
    %23 = vector.shape_cast %22 : vector<1x1x16x64xf32> to vector<16x64xf32>
    %cst_26 = arith.constant dense<0.000000e+00> : vector<8x64xf32>
    %24 = tpu.matmul %21, %23, %cst_26 {dimension_numbers = #tpu.dot_dimension_numbers<[1], [0], [0], [1], [0, 0, 1, 1], [], []>} : vector<8x16xf32>, vector<16x64xf32>, vector<8x64xf32> -> vector<8x64xf32>
    %25 = arith.addf %16, %24 : vector<8x64xf32>
    %c1_27 = arith.constant 1 : index
    %c0_28 = arith.constant 0 : index
    %c0_29 = arith.constant 0 : index
    %26 = vector.load %arg3[%c1_27, %c0_28, %c0_29] : memref<3x8x16xf32, #tpu.memory_space<vmem>>, vector<1x8x16xf32>
    %27 = vector.shape_cast %26 : vector<1x8x16xf32> to vector<8x16xf32>
    %c0_30 = arith.constant 0 : index
    %c0_31 = arith.constant 0 : index
    %c0_32 = arith.constant 0 : index
    %c0_33 = arith.constant 0 : index
    %28 = vector.load %arg2[%c0_30, %c0_31, %c0_32, %c0_33] : memref<1x2x16x16xf32, #tpu.memory_space<vmem>>, vector<1x1x16x16xf32>
    %29 = vector.shape_cast %28 : vector<1x1x16x16xf32> to vector<16x16xf32>
    %cst_34 = arith.constant dense<0.000000e+00> : vector<8x16xf32>
    %30 = tpu.matmul %27, %29, %cst_34 {dimension_numbers = #tpu.dot_dimension_numbers<[1], [0], [0], [1], [0, 0, 1, 1], [], []>} : vector<8x16xf32>, vector<16x16xf32>, vector<8x16xf32> -> vector<8x16xf32>
    %c1_35 = arith.constant 1 : index
    %c0_36 = arith.constant 0 : index
    %c0_37 = arith.constant 0 : index
    %c0_38 = arith.constant 0 : index
    %31 = vector.load %arg4[%c1_35, %c0_36, %c0_37, %c0_38] : memref<3x2x16x64xf32, #tpu.memory_space<vmem>>, vector<1x1x16x64xf32>
    %32 = vector.shape_cast %31 : vector<1x1x16x64xf32> to vector<16x64xf32>
    %cst_39 = arith.constant dense<0.000000e+00> : vector<8x64xf32>
    %33 = tpu.matmul %30, %32, %cst_39 {dimension_numbers = #tpu.dot_dimension_numbers<[1], [0], [0], [1], [0, 0, 1, 1], [], []>} : vector<8x16xf32>, vector<16x64xf32>, vector<8x64xf32> -> vector<8x64xf32>
    %34 = arith.addf %25, %33 : vector<8x64xf32>
    %c1_40 = arith.constant 1 : index
    %c0_41 = arith.constant 0 : index
    %c0_42 = arith.constant 0 : index
    %35 = vector.load %arg3[%c1_40, %c0_41, %c0_42] : memref<3x8x16xf32, #tpu.memory_space<vmem>>, vector<1x8x16xf32>
    %36 = vector.shape_cast %35 : vector<1x8x16xf32> to vector<8x16xf32>
    %c0_43 = arith.constant 0 : index
    %c1_44 = arith.constant 1 : index
    %c0_45 = arith.constant 0 : index
    %c0_46 = arith.constant 0 : index
    %37 = vector.load %arg2[%c0_43, %c1_44, %c0_45, %c0_46] : memref<1x2x16x16xf32, #tpu.memory_space<vmem>>, vector<1x1x16x16xf32>
    %38 = vector.shape_cast %37 : vector<1x1x16x16xf32> to vector<16x16xf32>
    %cst_47 = arith.constant dense<0.000000e+00> : vector<8x16xf32>
    %39 = tpu.matmul %36, %38, %cst_47 {dimension_numbers = #tpu.dot_dimension_numbers<[1], [0], [0], [1], [0, 0, 1, 1], [], []>} : vector<8x16xf32>, vector<16x16xf32>, vector<8x16xf32> -> vector<8x16xf32>
    %c1_48 = arith.constant 1 : index
    %c1_49 = arith.constant 1 : index
    %c0_50 = arith.constant 0 : index
    %c0_51 = arith.constant 0 : index
    %40 = vector.load %arg4[%c1_48, %c1_49, %c0_50, %c0_51] : memref<3x2x16x64xf32, #tpu.memory_space<vmem>>, vector<1x1x16x64xf32>
    %41 = vector.shape_cast %40 : vector<1x1x16x64xf32> to vector<16x64xf32>
    %cst_52 = arith.constant dense<0.000000e+00> : vector<8x64xf32>
    %42 = tpu.matmul %39, %41, %cst_52 {dimension_numbers = #tpu.dot_dimension_numbers<[1], [0], [0], [1], [0, 0, 1, 1], [], []>} : vector<8x16xf32>, vector<16x64xf32>, vector<8x64xf32> -> vector<8x64xf32>
    %43 = arith.addf %34, %42 : vector<8x64xf32>
    %c2 = arith.constant 2 : index
    %c0_53 = arith.constant 0 : index
    %c0_54 = arith.constant 0 : index
    %44 = vector.load %arg3[%c2, %c0_53, %c0_54] : memref<3x8x16xf32, #tpu.memory_space<vmem>>, vector<1x8x16xf32>
    %45 = vector.shape_cast %44 : vector<1x8x16xf32> to vector<8x16xf32>
    %c0_55 = arith.constant 0 : index
    %c0_56 = arith.constant 0 : index
    %c0_57 = arith.constant 0 : index
    %c0_58 = arith.constant 0 : index
    %46 = vector.load %arg2[%c0_55, %c0_56, %c0_57, %c0_58] : memref<1x2x16x16xf32, #tpu.memory_space<vmem>>, vector<1x1x16x16xf32>
    %47 = vector.shape_cast %46 : vector<1x1x16x16xf32> to vector<16x16xf32>
    %cst_59 = arith.constant dense<0.000000e+00> : vector<8x16xf32>
    %48 = tpu.matmul %45, %47, %cst_59 {dimension_numbers = #tpu.dot_dimension_numbers<[1], [0], [0], [1], [0, 0, 1, 1], [], []>} : vector<8x16xf32>, vector<16x16xf32>, vector<8x16xf32> -> vector<8x16xf32>
    %c2_60 = arith.constant 2 : index
    %c0_61 = arith.constant 0 : index
    %c0_62 = arith.constant 0 : index
    %c0_63 = arith.constant 0 : index
    %49 = vector.load %arg4[%c2_60, %c0_61, %c0_62, %c0_63] : memref<3x2x16x64xf32, #tpu.memory_space<vmem>>, vector<1x1x16x64xf32>
    %50 = vector.shape_cast %49 : vector<1x1x16x64xf32> to vector<16x64xf32>
    %cst_64 = arith.constant dense<0.000000e+00> : vector<8x64xf32>
    %51 = tpu.matmul %48, %50, %cst_64 {dimension_numbers = #tpu.dot_dimension_numbers<[1], [0], [0], [1], [0, 0, 1, 1], [], []>} : vector<8x16xf32>, vector<16x64xf32>, vector<8x64xf32> -> vector<8x64xf32>
    %52 = arith.addf %43, %51 : vector<8x64xf32>
    %c2_65 = arith.constant 2 : index
    %c0_66 = arith.constant 0 : index
    %c0_67 = arith.constant 0 : index
    %53 = vector.load %arg3[%c2_65, %c0_66, %c0_67] : memref<3x8x16xf32, #tpu.memory_space<vmem>>, vector<1x8x16xf32>
    %54 = vector.shape_cast %53 : vector<1x8x16xf32> to vector<8x16xf32>
    %c0_68 = arith.constant 0 : index
    %c1_69 = arith.constant 1 : index
    %c0_70 = arith.constant 0 : index
    %c0_71 = arith.constant 0 : index
    %55 = vector.load %arg2[%c0_68, %c1_69, %c0_70, %c0_71] : memref<1x2x16x16xf32, #tpu.memory_space<vmem>>, vector<1x1x16x16xf32>
    %56 = vector.shape_cast %55 : vector<1x1x16x16xf32> to vector<16x16xf32>
    %cst_72 = arith.constant dense<0.000000e+00> : vector<8x16xf32>
    %57 = tpu.matmul %54, %56, %cst_72 {dimension_numbers = #tpu.dot_dimension_numbers<[1], [0], [0], [1], [0, 0, 1, 1], [], []>} : vector<8x16xf32>, vector<16x16xf32>, vector<8x16xf32> -> vector<8x16xf32>
    %c2_73 = arith.constant 2 : index
    %c1_74 = arith.constant 1 : index
    %c0_75 = arith.constant 0 : index
    %c0_76 = arith.constant 0 : index
    %58 = vector.load %arg4[%c2_73, %c1_74, %c0_75, %c0_76] : memref<3x2x16x64xf32, #tpu.memory_space<vmem>>, vector<1x1x16x64xf32>
    %59 = vector.shape_cast %58 : vector<1x1x16x64xf32> to vector<16x64xf32>
    %cst_77 = arith.constant dense<0.000000e+00> : vector<8x64xf32>
    %60 = tpu.matmul %57, %59, %cst_77 {dimension_numbers = #tpu.dot_dimension_numbers<[1], [0], [0], [1], [0, 0, 1, 1], [], []>} : vector<8x16xf32>, vector<16x64xf32>, vector<8x64xf32> -> vector<8x64xf32>
    %61 = arith.addf %52, %60 : vector<8x64xf32>
    %cst_78 = arith.constant 0.000000e+00 : f32
    %62 = vector.broadcast %cst_78 : f32 to vector<8x64xf32>
    %63 = arith.maximumf %61, %62 : vector<8x64xf32>
    %c0_79 = arith.constant 0 : index
    %c0_80 = arith.constant 0 : index
    %64 = vector.load %arg9[%c0_79, %c0_80] : memref<1x64xf32, #tpu.memory_space<vmem>>, vector<1x64xf32>
    %c0_81 = arith.constant 0 : index
    %c0_82 = arith.constant 0 : index
    %c0_83 = arith.constant 0 : index
    %65 = vector.load %arg7[%c0_81, %c0_82, %c0_83] : memref<3x4x8xf32, #tpu.memory_space<vmem>>, vector<1x4x8xf32>
    %66 = vector.shape_cast %65 : vector<1x4x8xf32> to vector<4x8xf32>
    %cst_84 = arith.constant dense<0.000000e+00> : vector<4x64xf32>
    %67 = tpu.matmul %66, %63, %cst_84 {dimension_numbers = #tpu.dot_dimension_numbers<[1], [0], [0], [1], [0, 0, 1, 1], [], []>} : vector<4x8xf32>, vector<8x64xf32>, vector<4x64xf32> -> vector<4x64xf32>
    %c0_85 = arith.constant 0 : index
    %c0_86 = arith.constant 0 : index
    %c0_87 = arith.constant 0 : index
    %68 = vector.load %arg8[%c0_85, %c0_86, %c0_87] : memref<3x64x64xf32, #tpu.memory_space<vmem>>, vector<1x64x64xf32>
    %69 = vector.shape_cast %68 : vector<1x64x64xf32> to vector<64x64xf32>
    %cst_88 = arith.constant dense<0.000000e+00> : vector<4x64xf32>
    %70 = tpu.matmul %67, %69, %cst_88 {dimension_numbers = #tpu.dot_dimension_numbers<[1], [0], [0], [1], [0, 0, 1, 1], [], []>} : vector<4x64xf32>, vector<64x64xf32>, vector<4x64xf32> -> vector<4x64xf32>
    %71 = vector.broadcast %64 : vector<1x64xf32> to vector<4x64xf32>
    %72 = arith.addf %71, %70 : vector<4x64xf32>
    %c1_89 = arith.constant 1 : index
    %c0_90 = arith.constant 0 : index
    %c0_91 = arith.constant 0 : index
    %73 = vector.load %arg7[%c1_89, %c0_90, %c0_91] : memref<3x4x8xf32, #tpu.memory_space<vmem>>, vector<1x4x8xf32>
    %74 = vector.shape_cast %73 : vector<1x4x8xf32> to vector<4x8xf32>
    %cst_92 = arith.constant dense<0.000000e+00> : vector<4x64xf32>
    %75 = tpu.matmul %74, %63, %cst_92 {dimension_numbers = #tpu.dot_dimension_numbers<[1], [0], [0], [1], [0, 0, 1, 1], [], []>} : vector<4x8xf32>, vector<8x64xf32>, vector<4x64xf32> -> vector<4x64xf32>
    %c1_93 = arith.constant 1 : index
    %c0_94 = arith.constant 0 : index
    %c0_95 = arith.constant 0 : index
    %76 = vector.load %arg8[%c1_93, %c0_94, %c0_95] : memref<3x64x64xf32, #tpu.memory_space<vmem>>, vector<1x64x64xf32>
    %77 = vector.shape_cast %76 : vector<1x64x64xf32> to vector<64x64xf32>
    %cst_96 = arith.constant dense<0.000000e+00> : vector<4x64xf32>
    %78 = tpu.matmul %75, %77, %cst_96 {dimension_numbers = #tpu.dot_dimension_numbers<[1], [0], [0], [1], [0, 0, 1, 1], [], []>} : vector<4x64xf32>, vector<64x64xf32>, vector<4x64xf32> -> vector<4x64xf32>
    %79 = arith.addf %72, %78 : vector<4x64xf32>
    %c2_97 = arith.constant 2 : index
    %c0_98 = arith.constant 0 : index
    %c0_99 = arith.constant 0 : index
    %80 = vector.load %arg7[%c2_97, %c0_98, %c0_99] : memref<3x4x8xf32, #tpu.memory_space<vmem>>, vector<1x4x8xf32>
    %81 = vector.shape_cast %80 : vector<1x4x8xf32> to vector<4x8xf32>
    %cst_100 = arith.constant dense<0.000000e+00> : vector<4x64xf32>
    %82 = tpu.matmul %81, %63, %cst_100 {dimension_numbers = #tpu.dot_dimension_numbers<[1], [0], [0], [1], [0, 0, 1, 1], [], []>} : vector<4x8xf32>, vector<8x64xf32>, vector<4x64xf32> -> vector<4x64xf32>
    %c2_101 = arith.constant 2 : index
    %c0_102 = arith.constant 0 : index
    %c0_103 = arith.constant 0 : index
    %83 = vector.load %arg8[%c2_101, %c0_102, %c0_103] : memref<3x64x64xf32, #tpu.memory_space<vmem>>, vector<1x64x64xf32>
    %84 = vector.shape_cast %83 : vector<1x64x64xf32> to vector<64x64xf32>
    %cst_104 = arith.constant dense<0.000000e+00> : vector<4x64xf32>
    %85 = tpu.matmul %82, %84, %cst_104 {dimension_numbers = #tpu.dot_dimension_numbers<[1], [0], [0], [1], [0, 0, 1, 1], [], []>} : vector<4x64xf32>, vector<64x64xf32>, vector<4x64xf32> -> vector<4x64xf32>
    %86 = arith.addf %79, %85 : vector<4x64xf32>
    %cst_105 = arith.constant 0.000000e+00 : f32
    %87 = vector.broadcast %cst_105 : f32 to vector<4x64xf32>
    %88 = arith.maximumf %86, %87 : vector<4x64xf32>
    %c0_106 = arith.constant 0 : index
    %c0_107 = arith.constant 0 : index
    %89 = vector.load %arg12[%c0_106, %c0_107] : memref<1x64xf32, #tpu.memory_space<vmem>>, vector<1x64xf32>
    %c0_108 = arith.constant 0 : index
    %c0_109 = arith.constant 0 : index
    %c0_110 = arith.constant 0 : index
    %90 = vector.load %arg10[%c0_108, %c0_109, %c0_110] : memref<3x4x4xf32, #tpu.memory_space<vmem>>, vector<1x4x4xf32>
    %91 = vector.shape_cast %90 : vector<1x4x4xf32> to vector<4x4xf32>
    %cst_111 = arith.constant dense<0.000000e+00> : vector<4x64xf32>
    %92 = tpu.matmul %91, %88, %cst_111 {dimension_numbers = #tpu.dot_dimension_numbers<[1], [0], [0], [1], [0, 0, 1, 1], [], []>} : vector<4x4xf32>, vector<4x64xf32>, vector<4x64xf32> -> vector<4x64xf32>
    %c0_112 = arith.constant 0 : index
    %c0_113 = arith.constant 0 : index
    %c0_114 = arith.constant 0 : index
    %93 = vector.load %arg11[%c0_112, %c0_113, %c0_114] : memref<3x64x64xf32, #tpu.memory_space<vmem>>, vector<1x64x64xf32>
    %94 = vector.shape_cast %93 : vector<1x64x64xf32> to vector<64x64xf32>
    %cst_115 = arith.constant dense<0.000000e+00> : vector<4x64xf32>
    %95 = tpu.matmul %92, %94, %cst_115 {dimension_numbers = #tpu.dot_dimension_numbers<[1], [0], [0], [1], [0, 0, 1, 1], [], []>} : vector<4x64xf32>, vector<64x64xf32>, vector<4x64xf32> -> vector<4x64xf32>
    %96 = vector.broadcast %89 : vector<1x64xf32> to vector<4x64xf32>
    %97 = arith.addf %96, %95 : vector<4x64xf32>
    %c1_116 = arith.constant 1 : index
    %c0_117 = arith.constant 0 : index
    %c0_118 = arith.constant 0 : index
    %98 = vector.load %arg10[%c1_116, %c0_117, %c0_118] : memref<3x4x4xf32, #tpu.memory_space<vmem>>, vector<1x4x4xf32>
    %99 = vector.shape_cast %98 : vector<1x4x4xf32> to vector<4x4xf32>
    %cst_119 = arith.constant dense<0.000000e+00> : vector<4x64xf32>
    %100 = tpu.matmul %99, %88, %cst_119 {dimension_numbers = #tpu.dot_dimension_numbers<[1], [0], [0], [1], [0, 0, 1, 1], [], []>} : vector<4x4xf32>, vector<4x64xf32>, vector<4x64xf32> -> vector<4x64xf32>
    %c1_120 = arith.constant 1 : index
    %c0_121 = arith.constant 0 : index
    %c0_122 = arith.constant 0 : index
    %101 = vector.load %arg11[%c1_120, %c0_121, %c0_122] : memref<3x64x64xf32, #tpu.memory_space<vmem>>, vector<1x64x64xf32>
    %102 = vector.shape_cast %101 : vector<1x64x64xf32> to vector<64x64xf32>
    %cst_123 = arith.constant dense<0.000000e+00> : vector<4x64xf32>
    %103 = tpu.matmul %100, %102, %cst_123 {dimension_numbers = #tpu.dot_dimension_numbers<[1], [0], [0], [1], [0, 0, 1, 1], [], []>} : vector<4x64xf32>, vector<64x64xf32>, vector<4x64xf32> -> vector<4x64xf32>
    %104 = arith.addf %97, %103 : vector<4x64xf32>
    %c2_124 = arith.constant 2 : index
    %c0_125 = arith.constant 0 : index
    %c0_126 = arith.constant 0 : index
    %105 = vector.load %arg10[%c2_124, %c0_125, %c0_126] : memref<3x4x4xf32, #tpu.memory_space<vmem>>, vector<1x4x4xf32>
    %106 = vector.shape_cast %105 : vector<1x4x4xf32> to vector<4x4xf32>
    %cst_127 = arith.constant dense<0.000000e+00> : vector<4x64xf32>
    %107 = tpu.matmul %106, %88, %cst_127 {dimension_numbers = #tpu.dot_dimension_numbers<[1], [0], [0], [1], [0, 0, 1, 1], [], []>} : vector<4x4xf32>, vector<4x64xf32>, vector<4x64xf32> -> vector<4x64xf32>
    %c2_128 = arith.constant 2 : index
    %c0_129 = arith.constant 0 : index
    %c0_130 = arith.constant 0 : index
    %108 = vector.load %arg11[%c2_128, %c0_129, %c0_130] : memref<3x64x64xf32, #tpu.memory_space<vmem>>, vector<1x64x64xf32>
    %109 = vector.shape_cast %108 : vector<1x64x64xf32> to vector<64x64xf32>
    %cst_131 = arith.constant dense<0.000000e+00> : vector<4x64xf32>
    %110 = tpu.matmul %107, %109, %cst_131 {dimension_numbers = #tpu.dot_dimension_numbers<[1], [0], [0], [1], [0, 0, 1, 1], [], []>} : vector<4x64xf32>, vector<64x64xf32>, vector<4x64xf32> -> vector<4x64xf32>
    %111 = arith.addf %104, %110 : vector<4x64xf32>
    %cst_132 = arith.constant 0.000000e+00 : f32
    %112 = vector.broadcast %cst_132 : f32 to vector<4x64xf32>
    %113 = arith.maximumf %111, %112 : vector<4x64xf32>
    %c0_133 = arith.constant 0 : index
    %c0_134 = arith.constant 0 : index
    %114 = vector.load %arg13[%c0_133, %c0_134] : memref<64x12xf32, #tpu.memory_space<vmem>>, vector<64x12xf32>
    %cst_135 = arith.constant dense<0.000000e+00> : vector<4x12xf32>
    %115 = tpu.matmul %113, %114, %cst_135 {dimension_numbers = #tpu.dot_dimension_numbers<[1], [0], [0], [1], [0, 0, 1, 1], [], []>} : vector<4x64xf32>, vector<64x12xf32>, vector<4x12xf32> -> vector<4x12xf32>
    %c0_136 = arith.constant 0 : index
    %c0_137 = arith.constant 0 : index
    %116 = vector.load %arg14[%c0_136, %c0_137] : memref<1x12xf32, #tpu.memory_space<vmem>>, vector<1x12xf32>
    %117 = vector.broadcast %116 : vector<1x12xf32> to vector<4x12xf32>
    %118 = arith.addf %115, %117 : vector<4x12xf32>
    %119 = tpu.iota {dimensions = array<i32: 1>} : vector<4x12xi32>
    %c4_i32 = arith.constant 4 : i32
    %120 = vector.broadcast %c4_i32 : i32 to vector<4x12xi32>
    %121 = arith.cmpi slt, %119, %120 : vector<4x12xi32>
    %122 = arith.negf %118 : vector<4x12xf32>
    %123 = math.exp %122 : vector<4x12xf32>
    %cst_138 = arith.constant 1.000000e+00 : f32
    %124 = vector.broadcast %cst_138 : f32 to vector<4x12xf32>
    %125 = arith.addf %124, %123 : vector<4x12xf32>
    %126 = arith.divf %124, %125 : vector<4x12xf32>
    %127 = arith.select %121, %126, %118 : vector<4x12xi1>, vector<4x12xf32>
    %c0_139 = arith.constant 0 : index
    %c0_140 = arith.constant 0 : index
    %c0_141 = arith.constant 0 : index
    %128 = vector.load %arg15[%c0_139, %c0_140, %c0_141] : memref<1x4x12xf32, #tpu.memory_space<vmem>>, vector<1x4x12xf32>
    %129 = vector.shape_cast %128 : vector<1x4x12xf32> to vector<4x12xf32>
    %130 = vector.shape_cast %127 : vector<4x12xf32> to vector<1x4x12xf32>
    tpu.vector_store %arg15[%c0_139, %c0_140, %c0_141], %130 {strides = array<i32>} : memref<1x4x12xf32, #tpu.memory_space<vmem>>, vector<1x4x12xf32>,
    return
  }
  func.func @transform_0(%arg0: i32) -> i32 {
    %c0_i32 = arith.constant 0 : i32
    %c0_i32_0 = arith.constant 0 : i32
    return %c0_i32 : i32
  }
  func.func @transform_1(%arg0: i32) -> (i32, i32, i32, i32) {
    %c0_i32 = arith.constant 0 : i32
    %c0_i32_0 = arith.constant 0 : i32
    %c0_i32_1 = arith.constant 0 : i32
    %c0_i32_2 = arith.constant 0 : i32
    return %arg0, %c0_i32, %c0_i32_0, %c0_i32_1 : i32, i32, i32, i32
  }
  func.func @transform_2(%arg0: i32) -> (i32, i32, i32) {
    %c0_i32 = arith.constant 0 : i32
    %c0_i32_0 = arith.constant 0 : i32
    %c0_i32_1 = arith.constant 0 : i32
    %c0_i32_2 = arith.constant 0 : i32
    return %c0_i32, %c0_i32_0, %c0_i32_1 : i32, i32, i32
  }
  func.func @transform_3(%arg0: i32) -> (i32, i32, i32, i32) {
    %c0_i32 = arith.constant 0 : i32
    %c0_i32_0 = arith.constant 0 : i32
    %c0_i32_1 = arith.constant 0 : i32
    %c0_i32_2 = arith.constant 0 : i32
    %c0_i32_3 = arith.constant 0 : i32
    return %c0_i32, %c0_i32_0, %c0_i32_1, %c0_i32_2 : i32, i32, i32, i32
  }
  func.func @transform_4(%arg0: i32) -> (i32, i32) {
    %c0_i32 = arith.constant 0 : i32
    %c0_i32_0 = arith.constant 0 : i32
    %c0_i32_1 = arith.constant 0 : i32
    return %c0_i32, %c0_i32_0 : i32, i32
  }
  func.func @transform_5(%arg0: i32) -> (i32, i32) {
    %c0_i32 = arith.constant 0 : i32
    %c0_i32_0 = arith.constant 0 : i32
    %c0_i32_1 = arith.constant 0 : i32
    return %c0_i32, %c0_i32_0 : i32, i32
  }
  func.func @transform_6(%arg0: i32) -> (i32, i32, i32) {
    %c0_i32 = arith.constant 0 : i32
    %c0_i32_0 = arith.constant 0 : i32
    %c0_i32_1 = arith.constant 0 : i32
    %c0_i32_2 = arith.constant 0 : i32
    return %c0_i32, %c0_i32_0, %c0_i32_1 : i32, i32, i32
  }
  func.func @transform_7(%arg0: i32) -> (i32, i32, i32) {
    %c0_i32 = arith.constant 0 : i32
    %c0_i32_0 = arith.constant 0 : i32
    %c0_i32_1 = arith.constant 0 : i32
    %c0_i32_2 = arith.constant 0 : i32
    return %c0_i32, %c0_i32_0, %c0_i32_1 : i32, i32, i32
  }
  func.func @transform_8(%arg0: i32) -> (i32, i32) {
    %c0_i32 = arith.constant 0 : i32
    %c0_i32_0 = arith.constant 0 : i32
    %c0_i32_1 = arith.constant 0 : i32
    return %c0_i32, %c0_i32_0 : i32, i32
  }
  func.func @transform_9(%arg0: i32) -> (i32, i32, i32) {
    %c0_i32 = arith.constant 0 : i32
    %c0_i32_0 = arith.constant 0 : i32
    %c0_i32_1 = arith.constant 0 : i32
    %c0_i32_2 = arith.constant 0 : i32
    return %c0_i32, %c0_i32_0, %c0_i32_1 : i32, i32, i32
  }
  func.func @transform_10(%arg0: i32) -> (i32, i32, i32) {
    %c0_i32 = arith.constant 0 : i32
    %c0_i32_0 = arith.constant 0 : i32
    %c0_i32_1 = arith.constant 0 : i32
    %c0_i32_2 = arith.constant 0 : i32
    return %c0_i32, %c0_i32_0, %c0_i32_1 : i32, i32, i32
  }
  func.func @transform_11(%arg0: i32) -> (i32, i32) {
    %c0_i32 = arith.constant 0 : i32
    %c0_i32_0 = arith.constant 0 : i32
    %c0_i32_1 = arith.constant 0 : i32
    return %c0_i32, %c0_i32_0 : i32, i32
  }
  func.func @transform_12(%arg0: i32) -> (i32, i32) {
    %c0_i32 = arith.constant 0 : i32
    %c0_i32_0 = arith.constant 0 : i32
    %c0_i32_1 = arith.constant 0 : i32
    return %c0_i32, %c0_i32_0 : i32, i32
  }
  func.func @transform_13(%arg0: i32) -> (i32, i32) {
    %c0_i32 = arith.constant 0 : i32
    %c0_i32_0 = arith.constant 0 : i32
    %c0_i32_1 = arith.constant 0 : i32
    return %c0_i32, %c0_i32_0 : i32, i32
  }
  func.func @transform_14(%arg0: i32) -> (i32, i32, i32) {
    %c0_i32 = arith.constant 0 : i32
    %c0_i32_0 = arith.constant 0 : i32
    %c0_i32_1 = arith.constant 0 : i32
    return %arg0, %c0_i32, %c0_i32_0 : i32, i32, i32
  }
}

</mosaic_0001>

<bundles_post_ra>
// kernel: tpu_custom_call.1
= control target key start
LH: loop header
LB: loop body
LE: loop exit
PB: predicated region body
PF: predicated region fallthrough
CT: control target
= control target key end

     0   :  { %s4103_s0 = inlined_call_operand.vmem [shape: f32[2], index: 0, kind: input, shape index: {}]   ;;  %s4104_s1 = inlined_call_operand.vmem [shape: f32[2,2,16,16], index: 1, kind: input, shape index: {}]   ;;  %s4105_s2 = inlined_call_operand.hbm [shape: f32[3,8,16], index: 2, kind: input, shape index: {}]   ;;  %s4106_s3 = inlined_call_operand.hbm [shape: f32[3,2,16,64], index: 3, kind: input, shape index: {}]   ;;  %s4107_s4 = inlined_call_operand.hbm [shape: f32[8,64], index: 4, kind: input, shape index: {}]   ;;  %s4108_s5 = inlined_call_operand.vmem [shape: f32[1,64], index: 5, kind: input, shape index: {}]   ;;  %s4109_s6 = inlined_call_operand.vmem [shape: f32[3,4,8], index: 6, kind: input, shape index: {}]   ;;  %s4110_s7 = inlined_call_operand.hbm [shape: f32[3,64,64], index: 7, kind: input, shape index: {}]   ;;  %s4111_s8 = inlined_call_operand.vmem [shape: f32[1,64], index: 8, kind: input, shape index: {}]   ;;  %s4112_s9 = inlined_call_operand.vmem [shape: f32[3,4,4], index: 9, kind: input, shape index: {}]   ;;  %s4113_s10 = inlined_call_operand.hbm [shape: f32[3,64,64], index: 10, kind: input, shape index: {}]   ;;  %s4114_s11 = inlined_call_operand.vmem [shape: f32[1,64], index: 11, kind: input, shape index: {}]   ;;  %s4115_s12 = inlined_call_operand.vmem [shape: f32[64,12], index: 12, kind: input, shape index: {}]   ;;  %s4116_s13 = inlined_call_operand.vmem [shape: f32[1,12], index: 13, kind: input, shape index: {}]   ;;  %s4117_s14 = inlined_call_operand.hbm [shape: f32[2,4,12], index: 14, kind: output, shape index: {}]  }
   0x1   :  { %4132 = sst [smem:[#allocation26_spill]] %s4103_s0 }
   0x2   :  { %4133 = sst [smem:[#allocation27_spill]] %s4116_s13 }
   0x3   :  { %4134 = sst [smem:[#allocation28_spill]] %s4117_s14 }
   0x4   :  { %19 = vsyncpa [#allocation5], 0 }
   0x5   :  { %20 = vsyncpa [#allocation3], 0 }
   0x6   :  { %21 = vsyncpa [#allocation8], 0 }
   0x7   :  { %22 = vsyncpa [#allocation11], 0 }
   0x8   :  { %23 = vsyncpa [#allocation4], 0 }
   0x9   :  { %25 = vsyncpa [#allocation4 + $0x1], 0  ;;  %s3660_s29 = smov 0   ;;  %s3662_s30 = smov 0  }
   0xa   :  { %s3664_s15 = smov 0   ;;  %s3666_s16 = smov 0  }
   0xb LB: > { %4135 = sst [smem:[#allocation19_spill]] %s3559_s29  ;;  %s3681_s17 = sadd.s32 4294967295, %s3571_s16   ;;  %s3571_s16 = sphi %s3666_s16, %s4166_s16   ;;  %s3567_s15 = sphi %s3664_s15, %s4168_s15   ;;  %s3563_s30 = sphi %s3662_s30, %s4170_s30   ;;  %s3559_s29 = sphi %s3660_s29, %s4169_s29  }
   0xc   : > { %4136 = sst [smem:[#allocation20_spill]] %s3567_s15  ;;  %s2667_s18 = sadd.s32 4294967294, %s3571_s16  }
   0xd   : > { %4137 = sst [smem:[#allocation21_spill]] %s3571_s16  ;;  %s3685_s19 = sadd.s32 1, %s3571_s16  }
   0xe   : > { %4138 = sst [smem:[#allocation22_spill]] %s3685_s19  ;;  %s337_s20 = sadd.s32 1, %s3567_s15 }
   0xf   : > { %s334_s21 = ssub.s32 %s3571_s16, %s3685_s19  ;;  %p347_p0 = scmp.ne.s32.totalorder %s3567_s15, %s3563_s30 }
  0x10   : > { %p335_p1 = scmp.eq.s32.totalorder %s334_s21, 0  ;;  %p348_p2 = scmp.eq.s32.totalorder %s3681_s17, 1 }
  0x11   : > { %p353_p3 = scmp.ne.s32.totalorder %s3563_s30, %s3559_s29  ;;  %p354_p4 = scmp.eq.s32.totalorder %s2667_s18, 1 }
  0x12   : > { %s3696_s22 = scalar_select %p335_p1, %s3567_s15, %s337_s20  }
  0x13   : > { %p3698_p5 = por %p348_p2, %p347_p0  ;;  %p3702_p6 = por %p354_p4, %p353_p3 }
  0x14   : > { %4139 = sst [smem:[#allocation23_spill]] %s3696_s22  ;;  %p2668_p7 = scmp.ge.s32.totalorder %s3571_s16, 1 }
  0x15   : > { %s4140_s23 = scalar_select %p3698_p5, 1, 0 }
  0x16   : > { %s4142_s24 = scalar_select %p3702_p6, 1, 0 }
  0x17   : > { %4141 = sst [smem:[#allocation24_spill]] %s4140_s23  ;;  %p361_p8 = scmp.lt.s32.totalorder %s3571_s16, 3 }
  0x18   : > { %4143 = sst [smem:[#allocation25_spill]] %s4142_s24  ;;  %p4125_p9 = scmp.eq.s32.totalorder %s3681_s17, 0 }
  0x19   : > { %p3709_p10 = pnand %p2668_p7, %p361_p8  ;;  %s3573_s26 = smov [#allocation7]  }
  0x1a   : > { %s397_s27 = sshll.u32 %s3573_s26, 4  ;;  %s3574_s18 = smov [#allocation10]   ;;  %s3715_s27 = int_to_ptr.vmem [resolvable:$true] %s397_s27 }
  0x1b   : > { %s4144_s25 = scalar_select %p3709_p10, 1, 0 }
  0x1c   : > { %p3255_p11 = pneg %p3709_p10  ;;  %s427_s20 = sshll.u32 %s3574_s18, 4  ;;  %s3723_s20 = int_to_ptr.vmem [resolvable:$true] %s427_s20 }
  0x1d   : > { %s4146_s0 = sld [smem:[#allocation26_spill]]  ;;  %s3338_s24 = scalar_lea.hbm %s4106_s3, 1536 }
  0x1e   : > { %p3719_p12 = pnand %p4125_p9, %p3255_p11  ;;  %p3339_p13 = scmp.ne.s32.totalorder %s4106_s3, %s3338_s24 }
  0x1f   : > { %p3345_p3 = scmp.lt.u32.totalorder %s3338_s24, %s4106_s3 }
  0x20   : > { %p3738_p0 = pneg %p3719_p12 }
  0x22   : > { %p3341_p1 = pnand %p3738_p0, %p3339_p13 }
  0x23   : > { %s374_s15 = sshll.u32 %s4146_s0, 4  ;;  %s3728_s15 = int_to_ptr.vmem [resolvable:$true] %s374_s15 }
  0x24   : > { %p3342_p2 = pneg %p3341_p1 }
  0x26   : > { %p3347_p4 = pnand %p3345_p3, %p3342_p2 }
  0x28   : > { %3350 = shalt.err (!%p3347_p4)
}
  0x29   : > { %s3351_s29 = scalar_lea.vmem %s3715_s27, 1536  ;;  %p3359_p9 = scmp.lt.s32.totalorder %s3715_s27, %s3715_s27 }
  0x2a   : > { %p3352_p7 = scmp.ne.s32.totalorder %s3715_s27, %s3351_s29  ;;  %p3360_p6 = scmp.lt.s32.totalorder %s3351_s29, %s3351_s29 }
  0x2c   : > { %p3354_p8 = pnand %p3352_p7, %p3738_p0  ;;  %p3361_p13 = por %p3360_p6, %p3359_p9 }
  0x2e   : > { %p3355_p11 = pneg %p3354_p8 }
  0x30   : > { %p3362_p1 = pnand %p3361_p13, %p3355_p11 }
  0x32   : > { %3365 = shalt.err (!%p3362_p1)
}
  0x33   : > { %s4128_s16 = smov 128   ;;  %s3576_s19 = smov 8  }
  0x34   : > { %3264 = dma.hbm_to_vmem [thread:$0]  (!%p3719_p12), %s4106_s3, 1536, %s3715_s27, [#allocation8], %s4128_s16, %s4128_s16, %s3576_s19  }
  0x35   : > { %s3366_s18 = scalar_lea.hbm %s4110_s7, 3072 }
  0x36   : > { %p3367_p6 = scmp.ne.s32.totalorder %s4110_s7, %s3366_s18  ;;  %p3373_p3 = scmp.lt.u32.totalorder %s3366_s18, %s4110_s7 }
  0x38   : > { %p3369_p9 = pnand %p3367_p6, %p3738_p0 }
  0x3a   : > { %p3370_p2 = pneg %p3369_p9 }
  0x3c   : > { %p3375_p4 = pnand %p3373_p3, %p3370_p2 }
  0x3e   : > { %3378 = shalt.err (!%p3375_p4)
}
  0x3f   : > { %s3379_s27 = scalar_lea.vmem %s3723_s20, 3072  ;;  %p3387_p13 = scmp.lt.s32.totalorder %s3723_s20, %s3723_s20 }
  0x40   : > { %p3380_p7 = scmp.ne.s32.totalorder %s3723_s20, %s3379_s27  ;;  %p3388_p1 = scmp.lt.s32.totalorder %s3379_s27, %s3379_s27 }
  0x42   : > { %p3382_p8 = pnand %p3380_p7, %p3738_p0  ;;  %p3389_p6 = por %p3388_p1, %p3387_p13 }
  0x44   : > { %p3383_p11 = pneg %p3382_p8 }
  0x46   : > { %p3390_p9 = pnand %p3389_p6, %p3383_p11 }
  0x48   : > { %3393 = shalt.err (!%p3390_p9)
}
  0x49   : > { %3270 = dma.hbm_to_vmem [thread:$0]  (!%p3719_p12), %s4110_s7, 3072, %s3723_s20, [#allocation11], %s4128_s16, %s4128_s16, %s3576_s19  }
  0x4a   : > { %s3394_s23 = scalar_lea.vmem %s3728_s15, 16  ;;  %p3402_p7 = scmp.lt.s32.totalorder %s3728_s15, %s3728_s15 }
  0x4b   : > { %p3395_p2 = scmp.ne.s32.totalorder %s3728_s15, %s3394_s23  ;;  %p3403_p8 = scmp.lt.s32.totalorder %s3394_s23, %s3394_s23 }
  0x4d   : > { %p3397_p3 = pnand %p3395_p2, %p3738_p0  ;;  %p3404_p11 = por %p3403_p8, %p3402_p7 }
  0x4f   : > { %p3398_p4 = pneg %p3397_p3 }
  0x51   : > { %p3405_p13 = pnand %p3404_p11, %p3398_p4 }
  0x53   : > { %3408 = shalt.err (!%p3405_p13)
}
  0x54   : > { %s3577_s24 = smov [#allocation2]   ;;  %s3578_s21 = smov [#allocation6]  }
  0x55   : > { %3258 = dma.vmem_to_smem (!%p3719_p12), %s3728_s15, 16, %s3577_s24, [#allocation5]  }
  0x56   : > { %s384_s26 = sshll.u32 %s3578_s21, 4  ;;  %s3579_s20 = smov [#allocation9]   ;;  %s385_s26 = int_to_ptr.vmem [resolvable:$true] %s384_s26 }
  0x57   : > { %s411_s22 = sshll.u32 %s3579_s20, 4  ;;  %s3409_s27 = scalar_lea.hbm %s4105_s2, 384  ;;  %s412_s22 = int_to_ptr.vmem [resolvable:$true] %s411_s22 }
  0x58   : > { %p3410_p1 = scmp.ne.s32.totalorder %s4105_s2, %s3409_s27  ;;  %p3416_p2 = scmp.lt.u32.totalorder %s3409_s27, %s4105_s2 }
  0x5a   : > { %p3412_p6 = pnand %p3410_p1, %p3738_p0 }
  0x5c   : > { %p3413_p9 = pneg %p3412_p6 }
  0x5e   : > { %p3418_p3 = pnand %p3416_p2, %p3413_p9 }
  0x60   : > { %3421 = shalt.err (!%p3418_p3)
}
  0x61   : > { %s3422_s15 = scalar_lea.vmem %s385_s26, 384  ;;  %p3430_p11 = scmp.lt.s32.totalorder %s385_s26, %s385_s26 }
  0x62   : > { %p3423_p4 = scmp.ne.s32.totalorder %s385_s26, %s3422_s15  ;;  %p3431_p13 = scmp.lt.s32.totalorder %s3422_s15, %s3422_s15 }
  0x64   : > { %p3425_p7 = pnand %p3423_p4, %p3738_p0  ;;  %p3432_p5 = por %p3431_p13, %p3430_p11 }
  0x66   : > { %p3426_p8 = pneg %p3425_p7 }
  0x68   : > { %p3433_p10 = pnand %p3432_p5, %p3426_p8 }
  0x6a   : > { %3436 = shalt.err (!%p3433_p10)
}
  0x6b   : > { %s4148_s24 = smov 128   ;;  %s3437_s29 = scalar_lea.hbm %s4107_s4, 128 }
  0x6c   : > { %3261 = dma.hbm_to_vmem [thread:$0]  (!%p3719_p12), %s4105_s2, 384, %s385_s26, [#allocation3], %s4148_s24, %s4148_s24, %s3576_s19  }
  0x6d   : > { %p3438_p5 = scmp.ne.s32.totalorder %s4107_s4, %s3437_s29  ;;  %p3444_p6 = scmp.lt.u32.totalorder %s3437_s29, %s4107_s4 }
  0x6f   : > { %p3440_p10 = pnand %p3438_p5, %p3738_p0 }
  0x71   : > { %p3441_p1 = pneg %p3440_p10 }
  0x73   : > { %p3446_p9 = pnand %p3444_p6, %p3441_p1 }
  0x75   : > { %3449 = shalt.err (!%p3446_p9)
}
  0x76   : > { %s3450_s15 = scalar_lea.vmem %s412_s22, 128  ;;  %p3458_p7 = scmp.lt.s32.totalorder %s412_s22, %s412_s22 }
  0x77   : > { %p3451_p2 = scmp.ne.s32.totalorder %s412_s22, %s3450_s15  ;;  %p3459_p8 = scmp.lt.s32.totalorder %s3450_s15, %s3450_s15 }
  0x79   : > { %p3453_p3 = pnand %p3451_p2, %p3738_p0  ;;  %p3460_p11 = por %p3459_p8, %p3458_p7 }
  0x7b   : > { %p3454_p4 = pneg %p3453_p3 }
  0x7d   : > { %p3461_p13 = pnand %p3460_p11, %p3454_p4 }
  0x7f   : > { %3464 = shalt.err (!%p3461_p13)
}
  0x80   : > { %3267 = dma.hbm_to_vmem [thread:$0]  (!%p3719_p12), %s4107_s4, 128, %s412_s22, [#allocation8]  }
  0x81   : > { %s3580_s21 = smov [#allocation12]   ;;  %s3465_s27 = scalar_lea.hbm %s4113_s10, 3072 }
  0x82   : > { %s446_s20 = sshll.u32 %s3580_s21, 4  ;;  %p3466_p5 = scmp.ne.s32.totalorder %s4113_s10, %s3465_s27  ;;  %s447_s20 = int_to_ptr.vmem [resolvable:$true] %s446_s20 }
  0x83   : > { %p3472_p6 = scmp.lt.u32.totalorder %s3465_s27, %s4113_s10 }
  0x84   : > { %p3468_p10 = pnand %p3466_p5, %p3738_p0 }
  0x86   : > { %p3469_p1 = pneg %p3468_p10 }
  0x88   : > { %p3474_p9 = pnand %p3472_p6, %p3469_p1 }
  0x8a   : > { %3477 = shalt.err (!%p3474_p9)
}
  0x8b   : > { %s3478_s22 = scalar_lea.vmem %s447_s20, 3072  ;;  %p3486_p7 = scmp.lt.s32.totalorder %s447_s20, %s447_s20 }
  0x8c   : > { %p3479_p2 = scmp.ne.s32.totalorder %s447_s20, %s3478_s22  ;;  %p3487_p8 = scmp.lt.s32.totalorder %s3478_s22, %s3478_s22 }
  0x8e   : > { %p3481_p3 = pnand %p3479_p2, %p3738_p0  ;;  %p3488_p11 = por %p3487_p8, %p3486_p7 }
  0x90   : > { %p3482_p4 = pneg %p3481_p3 }
  0x92   : > { %p3489_p13 = pnand %p3488_p11, %p3482_p4 }
  0x94   : > { %3492 = shalt.err (!%p3489_p13)
}
  0x95   : > { %3273 = dma.hbm_to_vmem [thread:$0]  (!%p3719_p12), %s4113_s10, 3072, %s447_s20, [#allocation11], %s4148_s24, %s4148_s24, %s3576_s19  }
  0x96   : > { %p4149_p5 = scmp.ne.s32.totalorder %s4144_s25, 0 }
  0x97   : > { %p4150_p0 = scmp.eq.s32.totalorder (!%p4149_p5), %s3681_s17, 0 }
  0x98   : > { %479 = sbr.rel (%p4149_p5) target bundleno = 2029 (0x7ed), region = 76 }
  0x9f   : > { %3538 = dma.done.wait (%p4150_p0), [#allocation5], 16   ;;  %p4151_p10 = pmov %p4150_p0 }
  0xa0   : > { %p4152_p1 = pmov %p4150_p0 }
  0xa1   : > { %3540 = vsyncadd (%p4151_p10), [#allocation5], 4294967280 }
  0xa2   : > { %3542 = dma.done.wait (%p4152_p1), [#allocation3], 384   ;;  %p4153_p6 = pmov %p4150_p0 }
  0xa3   : > { %p4154_p9 = pmov %p4150_p0 }
  0xa4   : > { %3544 = vsyncadd (%p4153_p6), [#allocation3], 4294966912 }
  0xa5   : > { %3546 = dma.done.wait (%p4154_p9), [#allocation8], 1664   ;;  %p4155_p12 = pmov %p4150_p0 }
  0xa6   : > { %p4156_p2 = pmov %p4150_p0 }
  0xa7   : > { %3548 = vsyncadd (%p4155_p12), [#allocation8], 4294965632 }
  0xa8   : > { %3550 = dma.done.wait (%p4156_p2), [#allocation11], 6144   ;;  %p4157_p3 = pmov %p4150_p0 }
  0xaa   : > { %3552 = vsyncadd (%p4157_p3), [#allocation11], 4294961152 }
  0xab   : > { %505 = sfence }
  0xac   : > { %p546_p4 = scmp.lt.s32.totalorder %s3681_s17, 1  ;;  %v3581_v0 = vmov 0.0|0.0   ;;  %vm3582_vm0 = vmmov 0   ;;  %v3583_v1 = vmov 0.0   ;;  %v640_v2 = vld [vmem:[#allocation7] sm:$0xff]  ;;  %v641_v3 = vld [vmem:[#allocation7 + $0x8] sm:$0xff] }
  0xad   : > { %3088 = vmatprep.subr.bf16.mxu0 %v3581_v0  ;;  %2845 = vmatprep.mubr.msk.f32.mxu0 %vm3582_vm0, %v3583_v1  ;;  %v3092_v4 = vpack.c.bf16 %v641_v3, %v640_v2  ;;  %v563_v10 = vld [vmem:[#allocation6] sm:$0xff]  ;;  %vm566_vm1 = vcmask 130048   ;;  %v867_v12 = vld [vmem:[#allocation6 + $0x8] sm:$0xff]  ;;  %v1166_v13 = vld [vmem:[#allocation6 + $0x10] sm:$0xff]  ;;  %s551_s21 = sld [smem:[#allocation2 + %s3681_s17]]  ;;  %vm1467_vm2 = vcmask 64512  }
  0xae   : > { %s547_s14 = scalar_select %p546_p4, %s3681_s17, 1  ;;  %3091 = vmatprep.subr.bf16.mxu1 %v3581_v0  ;;  %2852 = vmatprep.mubr.msk.f32.mxu1 %vm3582_vm0, %v3583_v1  ;;  %v790_v14 = vld [vmem:[#allocation7 + $0x10] sm:$0xff]  ;;  %v791_v15 = vld [vmem:[#allocation7 + $0x18] sm:$0xff]  ;;  %v942_v19 = vld [vmem:[#allocation7 + $0x20] sm:$0xff]  ;;  %vm1549_vm3 = vcmask 523264   ;;  %vm1953_vm4 = vcmask 1043456  }
  0xaf   : > { %3093 = vmatpush3.bf16.msra.mxu1 %v3092_v4  ;;  %v3098_v16 = vpack.c.bf16 %v791_v15, %v790_v14  ;;  %v943_v20 = vld [vmem:[#allocation7 + $0x28] sm:$0xff]  ;;  %v1089_v26 = vld [vmem:[#allocation7 + $0x30] sm:$0xff]  ;;  %v1090_v27 = vld [vmem:[#allocation7 + $0x38] sm:$0xff]  ;;  %vm1949_vm5 = vcmask 31744   ;;  %s4158_s29 = sld [smem:[#allocation27_spill]]  ;;  %s543_s27 = sand.u32 1, %s3563_s30  }
  0xb0   : > { %s2729_s25 = sshll.u32 %s547_s14, 5  ;;  %3097 = vmatprep.subr.bf16.mxu1 %v3581_v0  ;;  %v3104_v23 = vpack.c.bf16 %v943_v20, %v942_v19  ;;  %v3110_v30 = vpack.c.bf16 %v1090_v27, %v1089_v26  ;;  %v1241_v33 = vld [vmem:[#allocation7 + $0x40] sm:$0xff]  ;;  %v1242_v34 = vld [vmem:[#allocation7 + $0x48] sm:$0xff]  ;;  %v1388_v38 = vld [vmem:[#allocation7 + $0x50] sm:$0xff]  ;;  %s4159_s0 = sld [smem:[#allocation24_spill]]  ;;  %vm2530_vm7 = vcmask 93184  }
  0xb1   : > { %s550_s24 = scalar_lea.vmem %s4104_s1, %s2729_s25  ;;  %v3116_v37 = vpack.c.bf16 %v1242_v34, %v1241_v33  ;;  %v1389_v39 = vld [vmem:[#allocation7 + $0x58] sm:$0xff]  ;;  %v1541_v41 = vld [vmem:[#allocation10] sm:$0xff]  ;;  %v1542_v42 = vld [vmem:[#allocation10 + $0x8] sm:$0xff]  ;;  %s2683_s13 = sshll.u32 %s543_s27, 2 }
  0xb2   : > { %v564_v5 = vld [vmem:[%s550_s24] sm:$0xff]  ;;  %v565_v6 = vld [vmem:[%s550_s24 + $0x8] sm:$0xff]  ;;  %v2689_v7 = vld [vmem:[%s550_s24 + $0x10] sm:$0xff]  ;;  %v3122_v40 = vpack.c.bf16 %v1389_v39, %v1388_v38  ;;  %v3125_v44 = vpack.c.bf16 %v1542_v42, %v1541_v41  ;;  %s2726_s23 = sshll.u32 %s3681_s17, 6  ;;  %s545_s15 = scalar_lea.vmem [#allocation13], %s2683_s13 }
  0xb3   : > { %v3089_v8 = vpack.c.bf16 %v565_v6, %v564_v5  ;;  %v2690_v9 = vld [vmem:[%s550_s24 + $0x18] sm:$0xff]  ;;  %v1543_v43 = vld [vmem:[#allocation10 + $0x10] sm:$0xff]  ;;  %v1545_v47 = vld [vmem:[#allocation10 + $0x20] sm:$0xff]  ;;  %v553_v54 = vstv %s551_s21  ;;  %s2546_s22 = sshll.u32 %s545_s15, 4  ;;  %s4160_s14 = sld [smem:[#allocation28_spill]]  ;;  %s4063_s22 = int_to_ptr.vmem [resolvable:$true] %s2546_s22 }
  0xb4   : > { %v3095_v11 = vpack.c.bf16 %v2690_v9, %v2689_v7  ;;  %v1544_v45 = vld [vmem:[#allocation10 + $0x18] sm:$0xff]  ;;  %v1546_v48 = vld [vmem:[#allocation10 + $0x28] sm:$0xff]  ;;  %v1547_v50 = vld [vmem:[#allocation10 + $0x30] sm:$0xff]  ;;  %s2533_s28 = scalar_lea.sflag [#allocation4], %s543_s27  ;;  %s3493_s19 = scalar_lea.vmem %s4063_s22, 64 }
  0xb5   : > { %3090 = vmatpush3.bf16.msra.mxu0 %v3089_v8  ;;  %v3128_v46 = vpack.c.bf16 %v1544_v45, %v1543_v43  ;;  %v3131_v49 = vpack.c.bf16 %v1546_v48, %v1545_v47  ;;  %v1548_v51 = vld [vmem:[#allocation10 + $0x38] sm:$0xff]  ;;  %v2686_v56 = vld [vmem:[%s4108_s5] ss:$0 sm:$0xff]  ;;  %v2704_v63 = vld [vmem:[%s4109_s6 + $0x4] sm:$0xf]  ;;  %p3494_p7 = scmp.ne.s32.totalorder %s4063_s22, %s3493_s19  ;;  %s3584_s17 = smov [#allocation13]  }
  0xb6   : > { %3094 = vmatprep.subr.bf16.mxu0 %v3581_v0  ;;  %v3134_v52 = vpack.c.bf16 %v1548_v51, %v1547_v50  ;;  %v552_v53 = vld [vmem:[#allocation9] sm:$0xff]  ;;  %v1466_v62 = vld [vmem:[%s4109_s6] sm:$0xf]  ;;  %v2707_v2 = vld [vmem:[%s4109_s6 + $0x8] sm:$0xf]  ;;  %p4161_p8 = scmp.ne.s32.totalorder %s4159_s0, 0 }
  0xb7   : > { %v554_v55 = vmul.f32 %v553_v54, %v552_v53  ;;  %v1706_v3 = vld [vmem:[#allocation10 + $0x40] sm:$0xff]  ;;  %v1707_v4 = vld [vmem:[#allocation10 + $0x48] sm:$0xff]  ;;  %v1708_v6 = vld [vmem:[#allocation10 + $0x50] sm:$0xff]  ;;  %s3497_s24 = sshll.u32 %s3584_s17, 4  ;;  %s3498_s24 = int_to_ptr.vmem [resolvable:$false] %s3497_s24 }
  0xb8   : > { %2846 = vmatmul.mubr.msk.f32.vlgmr.msra.gmra.mrb[0].mxu0 %vm566_vm1, %v563_v10  ;;  %v3137_v5 = vpack.c.bf16 %v1707_v4, %v1706_v3  ;;  %v1709_v7 = vld [vmem:[#allocation10 + $0x58] sm:$0xff]  ;;  %v1868_v27 = vld [vmem:[#allocation10 + $0xa0] sm:$0xff]  ;;  %v2029_v42 = vld [vmem:[#allocation12 + $0x10] sm:$0xff]  ;;  %p3495_p11 = pnand %p3494_p7, %p4161_p8  ;;  %s3499_s21 = scalar_lea.vmem %s3498_s24, 128 }
  0xb9   : > { %3096 = vmatpush3.bf16.msra.mxu0 %v3095_v11  ;;  %2859 = vmatprep.mubr.msk.f32.mxu0 %vm3582_vm0, %v3583_v1  ;;  %v562_v57 = vadd.f32 %v2686_v56, %v554_v55  ;;  %v2703_v33 = vld [vmem:[%s4111_s8] ss:$0 sm:$0xff]  ;;  %v2030_v43 = vld [vmem:[#allocation12 + $0x18] sm:$0xff]  ;;  %v2033_v48 = vld [vmem:[#allocation12 + $0x30] sm:$0xff]  ;;  %s4061_s25 = scalar_lea.hbm %s4160_s14, %s2726_s23  ;;  %p3500_p5 = scmp.lt.s32.totalorder %s4063_s22, %s3498_s24 }
  0xba   : > { %3100 = vmatprep.subr.bf16.mxu0 %v3581_v0  ;;  %v2031_v45 = vld [vmem:[#allocation12 + $0x20] sm:$0xff]  ;;  %v2718_v51 = vld [vmem:[%s4112_s9 + $0x8] sm:$0xf]  ;;  %v2198_v3 = vld [vmem:[#allocation12 + $0x78] sm:$0xff]  ;;  %p3496_p13 = pneg %p3495_p11  ;;  %p3501_p0 = scmp.lt.s32.totalorder %s3499_s21, %s3493_s19 }
  0xbb   : > { %v2192_v53 = vld [vmem:[#allocation12 + $0x48] sm:$0xff]  ;;  %v2714_v56 = vld [vmem:[%s4112_s9 + $0x4] sm:$0xf] }
  0xbc   : > { %2860 = vmatmul.mubr.msk.f32.vlgmr.msra.gmra.mrb[2].mxu0 %vm566_vm1, %v563_v10  ;;  %v3140_v10 = vpack.c.bf16 %v1709_v7, %v1708_v6  ;;  %v2432_v7 = vld [vmem:[%s4115_s12] sm:$0xff]  ;;  %p3502_p10 = por %p3501_p0, %p3500_p5 }
  0xbd   : > { %3102 = vmatpush3.bf16.msra.mxu0 %v3089_v8  ;;  %2873 = vmatprep.mubr.msk.f32.mxu0 %vm3582_vm0, %v3583_v1 }
  0xbe   : > { %3106 = vmatprep.subr.bf16.mxu0 %v3581_v0  ;;  %p3503_p1 = pnand %p3502_p10, %p3496_p13 }
  0xc0   : > { %2874 = vmatmul.mubr.msk.f32.vlgmr.msra.gmra.mrb[4].mxu0 %vm566_vm1, %v867_v12 }
  0xc1   : > { %3108 = vmatpush3.bf16.msra.mxu0 %v3095_v11  ;;  %2887 = vmatprep.mubr.msk.f32.mxu0 %vm3582_vm0, %v3583_v1 }
  0xc2   : > { %3112 = vmatprep.subr.bf16.mxu0 %v3581_v0 }
  0xc4   : > { %2888 = vmatmul.mubr.msk.f32.vlgmr.msra.gmra.mrb[6].mxu0 %vm566_vm1, %v867_v12  ;;  %v1711_v12 = vld [vmem:[#allocation10 + $0x68] sm:$0xff] }
  0xc5   : > { %3114 = vmatpush3.bf16.msra.mxu0 %v3089_v8  ;;  %2901 = vmatprep.mubr.msk.f32.mxu0 %vm3582_vm0, %v3583_v1 }
  0xc6   : > { %3118 = vmatprep.subr.bf16.mxu0 %v3581_v0 }
  0xc8   : > { %2902 = vmatmul.mubr.msk.f32.vlgmr.msra.gmra.mrb[8].mxu0 %vm566_vm1, %v1166_v13 }
  0xc9   : > { %3120 = vmatpush3.bf16.msra.mxu0 %v3095_v11  ;;  %2915 = vmatprep.mubr.msk.f32.mxu0 %vm3582_vm0, %v3583_v1  ;;  %v1710_v11 = vld [vmem:[#allocation10 + $0x60] sm:$0xff] }
  0xca   : > { %2925 = vmatprep.subr.mxu0 %v3583_v1  ;;  %v3143_v15 = vpack.c.bf16 %v1711_v12, %v1710_v11  ;;  %v2435_v11 = vld [vmem:[%s4115_s12 + $0x18] sm:$0xff] }
  0xcc   : > { %2916 = vmatmul.mubr.msk.f32.vlgmr.msra.gmra.mrb[10].mxu0 %vm566_vm1, %v1166_v13 }
  0xcd   : > { %2927 = vmatprep.mubr.msk.f32.mxu0 %vm3582_vm0, %v3583_v1 }
 0x18b   : > { %v636_v17 = vpop.f32.mrb[0].mxu0 }
 0x18c   : > { %v2847_v18 = vpop.f32.mrb[1].mxu0  ;;  %2853 = vmatmul.mubr.msk.f32.vlgmr.msra.gmra.mrb[0].mxu1 %vm566_vm1, %v636_v17  ;;  %v1713_v17 = vld [vmem:[#allocation10 + $0x78] sm:$0xff] }
 0x18d   : > { %3099 = vmatpush3.bf16.msra.mxu1 %v3098_v16  ;;  %2866 = vmatprep.mubr.msk.f32.mxu1 %vm3582_vm0, %v3583_v1  ;;  %v1712_v16 = vld [vmem:[#allocation10 + $0x70] sm:$0xff] }
 0x18e   : > { %3103 = vmatprep.subr.bf16.mxu1 %v3581_v0  ;;  %v3146_v20 = vpack.c.bf16 %v1713_v17, %v1712_v16  ;;  %v2349_v16 = vld [vmem:[#allocation12 + $0x80] sm:$0xff]  ;;  %v2350_v17 = vld [vmem:[#allocation12 + $0x88] sm:$0xff] }
 0x18f   : > { %v785_v21 = vpop.f32.mrb[2].mxu0 }
 0x190   : > { %v2861_v22 = vpop.f32.mrb[3].mxu0 }
 0x191   : > { %v1865_v22 = vld [vmem:[#allocation10 + $0x88] sm:$0xff] }
 0x193   : > { %v937_v24 = vpop.f32.mrb[4].mxu0 }
 0x194   : > { %2867 = vmatmul.mubr.msk.f32.vlgmr.msra.gmra.mrb[0].mxu1 %vm566_vm1, %v785_v21  ;;  %v2875_v25 = vpop.f32.mrb[5].mxu0  ;;  %v1864_v21 = vld [vmem:[#allocation10 + $0x80] sm:$0xff] }
 0x195   : > { %3105 = vmatpush3.bf16.msra.mxu1 %v3104_v23  ;;  %2880 = vmatprep.mubr.msk.f32.mxu1 %vm3582_vm0, %v3583_v1  ;;  %v3149_v23 = vpack.c.bf16 %v1865_v22, %v1864_v21  ;;  %v1867_v25 = vld [vmem:[#allocation10 + $0x98] sm:$0xff] }
 0x196   : > { %3109 = vmatprep.subr.bf16.mxu1 %v3581_v0 }
 0x197   : > { %v1084_v28 = vpop.f32.mrb[6].mxu0 }
 0x198   : > { %v2889_v29 = vpop.f32.mrb[7].mxu0 }
 0x19b   : > { %v1236_v31 = vpop.f32.mrb[8].mxu0 }
 0x19c   : > { %2881 = vmatmul.mubr.msk.f32.vlgmr.msra.gmra.mrb[0].mxu1 %vm566_vm1, %v937_v24  ;;  %v2903_v32 = vpop.f32.mrb[9].mxu0  ;;  %v1866_v24 = vld [vmem:[#allocation10 + $0x90] sm:$0xff] }
 0x19d   : > { %3111 = vmatpush3.bf16.msra.mxu1 %v3110_v30  ;;  %2894 = vmatprep.mubr.msk.f32.mxu1 %vm3582_vm0, %v3583_v1  ;;  %v3152_v26 = vpack.c.bf16 %v1867_v25, %v1866_v24  ;;  %v1870_v30 = vld [vmem:[#allocation10 + $0xb0] sm:$0xff]  ;;  %v2353_v24 = vld [vmem:[#allocation12 + $0xa0] sm:$0xff]  ;;  %v2354_v25 = vld [vmem:[#allocation12 + $0xa8] sm:$0xff] }
 0x19e   : > { %3115 = vmatprep.subr.bf16.mxu1 %v3581_v0 }
 0x19f   : > { %v1383_v35 = vpop.f32.mrb[10].mxu0 }
 0x1a0   : > { %v2917_v36 = vpop.f32.mrb[11].mxu0 }
 0x1a1   : > { %v2028_v36 = vld [vmem:[#allocation12 + $0x8] sm:$0xff] }
 0x1a4   : > { %2895 = vmatmul.mubr.msk.f32.vlgmr.msra.gmra.mrb[0].mxu1 %vm566_vm1, %v1084_v28  ;;  %v1869_v28 = vld [vmem:[#allocation10 + $0xa8] sm:$0xff] }
 0x1a5   : > { %3117 = vmatpush3.bf16.msra.mxu1 %v3116_v37  ;;  %2908 = vmatprep.mubr.msk.f32.mxu1 %vm3582_vm0, %v3583_v1  ;;  %v3155_v29 = vpack.c.bf16 %v1869_v28, %v1868_v27  ;;  %v2355_v27 = vld [vmem:[#allocation12 + $0xb0] sm:$0xff]  ;;  %v2356_v28 = vld [vmem:[#allocation12 + $0xb8] sm:$0xff] }
 0x1a6   : > { %3121 = vmatprep.subr.bf16.mxu1 %v3581_v0 }
 0x1ac   : > { %2909 = vmatmul.mubr.msk.f32.vlgmr.msra.gmra.mrb[0].mxu1 %vm566_vm1, %v1236_v31  ;;  %v1871_v31 = vld [vmem:[#allocation10 + $0xb8] sm:$0xff] }
 0x1ad   : > { %3123 = vmatpush3.bf16.msra.mxu1 %v3122_v40  ;;  %2922 = vmatprep.mubr.msk.f32.mxu1 %vm3582_vm0, %v3583_v1  ;;  %v3158_v32 = vpack.c.bf16 %v1871_v31, %v1870_v30  ;;  %v1948_v40 = vld [vmem:[%s4112_s9] sm:$0xf]  ;;  %v2439_v30 = vld [vmem:[%s4115_s12 + $0x38] sm:$0xff] }
 0x1ae   : > { %3124 = vmatprep.subr.bf16.mxu1 %v3581_v0 }
 0x1b4   : > { %2923 = vmatmul.mubr.msk.f32.vlgmr.msra.gmra.mrb[0].mxu1 %vm566_vm1, %v1383_v35  ;;  %v2027_v35 = vld [vmem:[#allocation12] sm:$0xff] }
 0x1b5   : > { %2946 = vmatprep.mubr.msk.f32.mxu1 %vm3582_vm0, %v3583_v1  ;;  %3126 = vmatpush3.bf16.msra.mxu1 %v3125_v44  ;;  %v3161_v41 = vpack.c.bf16 %v2028_v36, %v2027_v35  ;;  %v3164_v44 = vpack.c.bf16 %v2030_v43, %v2029_v42  ;;  %v2722_v36 = vld [vmem:[%s4158_s29] ss:$0 sm:$0xff]  ;;  %v2520_v43 = vlaneseq }
 0x1b6   : > { %3127 = vmatprep.subr.bf16.mxu1 %v3581_v0 }
 0x1b9   : > { %3129 = vmatpush3.bf16.msra.mxu1 %v3128_v46  ;;  %v2032_v46 = vld [vmem:[#allocation12 + $0x28] sm:$0xff] }
 0x1ba   : > { %3130 = vmatprep.subr.bf16.mxu1 %v3581_v0  ;;  %v3167_v47 = vpack.c.bf16 %v2032_v46, %v2031_v45 }
 0x1bd   : > { %3132 = vmatpush3.bf16.msra.mxu1 %v3131_v49  ;;  %v2034_v49 = vld [vmem:[#allocation12 + $0x38] sm:$0xff] }
 0x1be   : > { %3133 = vmatprep.subr.bf16.mxu1 %v3581_v0  ;;  %v3170_v50 = vpack.c.bf16 %v2034_v49, %v2033_v48 }
 0x1c1   : > { %3135 = vmatpush3.bf16.msra.mxu1 %v3134_v52  ;;  %v2191_v52 = vld [vmem:[#allocation12 + $0x40] sm:$0xff] }
 0x1c2   : > { %3136 = vmatprep.subr.bf16.mxu1 %v3581_v0 }
 0x287   : > { %v1459_v58 = vpop.f32.mrb[0].mxu1 }
 0x288   : > { %v3208_v59 = vadd.f32 %v1459_v58, %v562_v57  ;;  %v2924_v60 = vpop.f32.mrb[1].mxu1  ;;  %v3173_v57 = vpack.c.bf16 %v2192_v53, %v2191_v52  ;;  %v2193_v58 = vld [vmem:[#allocation12 + $0x50] sm:$0xff] }
 0x28a   : > { %v1464_v61 = vmax.f32 %v3208_v59, 0.0  ;;  %v2194_v59 = vld [vmem:[#allocation12 + $0x58] sm:$0xff] }
 0x28b   : > { %v3176_v60 = vpack.c.bf16 %v2194_v59, %v2193_v58 }
 0x28c   : > { %2926 = vmatpush3.msra.mxu0 %v1464_v61 }
 0x28d   : > { %2928 = vmatmul.mubr.msk.f32.vlgmr.msra.gmra.mrb[12].mxu0 %vm1467_vm2, %v1466_v62  ;;  %2949 = vmatprep.subr.mxu0 %v3583_v1  ;;  %v2196_v62 = vld [vmem:[#allocation12 + $0x68] sm:$0xff] }
 0x28e   : > { %2950 = vmatpush3.msra.mxu0 %v1464_v61  ;;  %2951 = vmatprep.mubr.msk.f32.mxu0 %vm3582_vm0, %v3583_v1 }
 0x28f   : > { %2973 = vmatprep.subr.mxu0 %v3583_v1 }
 0x291   : > { %2952 = vmatmul.mubr.msk.f32.vlgmr.msra.gmra.mrb[14].mxu0 %vm1467_vm2, %v2704_v63 }
 0x292   : > { %2974 = vmatpush3.msra.mxu0 %v1464_v61  ;;  %2975 = vmatprep.mubr.msk.f32.mxu0 %vm3582_vm0, %v3583_v1  ;;  %v2195_v61 = vld [vmem:[#allocation12 + $0x60] sm:$0xff] }
 0x293   : > { %2997 = vmatprep.subr.mxu0 %v3583_v1  ;;  %v3179_v63 = vpack.c.bf16 %v2196_v62, %v2195_v61 }
 0x295   : > { %2976 = vmatmul.mubr.msk.f32.vlgmr.msra.gmra.mrb[16].mxu0 %vm1467_vm2, %v2707_v2  ;;  %v2197_v2 = vld [vmem:[#allocation12 + $0x70] sm:$0xff] }
 0x296   : > { %2999 = vmatprep.mubr.msk.f32.mxu0 %vm3582_vm0, %v3583_v1  ;;  %v3182_v4 = vpack.c.bf16 %v2198_v3, %v2197_v2 }
 0x360   : > { %v1537_v8 = vpop.f32.mrb[12].mxu0 }
 0x361   : > { %v2929_v9 = vpop.f32.mrb[13].mxu0  ;;  %2947 = vmatmul.mubr.msk.f32.vlgmr.msra.gmra.mrb[2].mxu1 %vm1549_vm3, %v1537_v8  ;;  %v2433_v8 = vld [vmem:[%s4115_s12 + $0x8] sm:$0xff] }
 0x362   : > { %3138 = vmatpush3.bf16.msra.mxu1 %v3137_v5  ;;  %2970 = vmatprep.mubr.msk.f32.mxu1 %vm3582_vm0, %v3583_v1  ;;  %v2434_v9 = vld [vmem:[%s4115_s12 + $0x10] sm:$0xff] }
 0x363   : > { %3139 = vmatprep.subr.bf16.mxu1 %v3581_v0  ;;  %v3200_v12 = vpack.c.bf16 %v2435_v11, %v2434_v9 }
 0x364   : > { %v1701_v13 = vpop.f32.mrb[14].mxu0 }
 0x365   : > { %v2953_v14 = vpop.f32.mrb[15].mxu0 }
 0x366   : > { %3141 = vmatpush3.bf16.msra.mxu1 %v3140_v10  ;;  %v3197_v10 = vpack.c.bf16 %v2433_v8, %v2432_v7  ;;  %v2437_v14 = vld [vmem:[%s4115_s12 + $0x28] sm:$0xff] }
 0x367   : > { %3142 = vmatprep.subr.bf16.mxu1 %v3581_v0 }
 0x368   : > { %v1859_v18 = vpop.f32.mrb[16].mxu0 }
 0x369   : > { %v2977_v19 = vpop.f32.mrb[17].mxu0 }
 0x36a   : > { %3144 = vmatpush3.bf16.msra.mxu1 %v3143_v15  ;;  %v2351_v19 = vld [vmem:[#allocation12 + $0x90] sm:$0xff] }
 0x36b   : > { %3145 = vmatprep.subr.bf16.mxu1 %v3581_v0 }
 0x36e   : > { %3147 = vmatpush3.bf16.msra.mxu1 %v3146_v20  ;;  %v2352_v20 = vld [vmem:[#allocation12 + $0x98] sm:$0xff] }
 0x36f   : > { %3148 = vmatprep.subr.bf16.mxu1 %v3581_v0 }
 0x371   : > { %2971 = vmatmul.mubr.msk.f32.vlgmr.msra.gmra.mrb[2].mxu1 %vm1549_vm3, %v1701_v13  ;;  %v2436_v13 = vld [vmem:[%s4115_s12 + $0x20] sm:$0xff] }
 0x372   : > { %3150 = vmatpush3.bf16.msra.mxu1 %v3149_v23  ;;  %2994 = vmatprep.mubr.msk.f32.mxu1 %vm3582_vm0, %v3583_v1  ;;  %v3203_v15 = vpack.c.bf16 %v2437_v14, %v2436_v13  ;;  %v3188_v23 = vpack.c.bf16 %v2352_v20, %v2351_v19 }
 0x373   : > { %3151 = vmatprep.subr.bf16.mxu1 %v3581_v0 }
 0x376   : > { %3153 = vmatpush3.bf16.msra.mxu1 %v3152_v26  ;;  %v3191_v26 = vpack.c.bf16 %v2354_v25, %v2353_v24 }
 0x377   : > { %3154 = vmatprep.subr.bf16.mxu1 %v3581_v0 }
 0x37a   : > { %3156 = vmatpush3.bf16.msra.mxu1 %v3155_v29  ;;  %v3194_v29 = vpack.c.bf16 %v2356_v28, %v2355_v27 }
 0x37b   : > { %3157 = vmatprep.subr.bf16.mxu1 %v3581_v0 }
 0x37e   : > { %3159 = vmatpush3.bf16.msra.mxu1 %v3158_v32  ;;  %v2713_v32 = vld [vmem:[%s4114_s11] ss:$0 sm:$0xff] }
 0x37f   : > { %3045 = vmatprep.subr.mxu1 %v3583_v1 }
 0x381   : > { %2995 = vmatmul.mubr.msk.f32.vlgmr.msra.gmra.mrb[2].mxu1 %vm1549_vm3, %v1859_v18  ;;  %v3185_v18 = vpack.c.bf16 %v2350_v17, %v2349_v16 }
 0x382   : > { %3047 = vmatprep.mubr.msk.f32.mxu1 %vm3582_vm0, %v3583_v1 }
 0x454   : > { %v1941_v34 = vpop.f32.mrb[2].mxu1 }
 0x455   : > { %v3209_v37 = vadd.f32 %v2703_v33, %v1941_v34  ;;  %v2996_v38 = vpop.f32.mrb[3].mxu1 }
 0x457   : > { %v1946_v39 = vmax.f32 %v3209_v37, 0.0 }
 0x459   : > { %2998 = vmatpush3.msk.msra.mxu0 %vm1953_vm4, %v1946_v39  ;;  %3046 = vmatpush3.msk.msra.mxu1 %vm1953_vm4, %v1946_v39 }
 0x45a   : > { %3000 = vmatmul.mubr.msk.f32.vlgmr.msra.gmra.mrb[18].mxu0 %vm1949_vm5, %v1948_v40  ;;  %3160 = vmatprep.subr.bf16.mxu0 %v3581_v0 }
 0x45b   : > { %3162 = vmatpush3.bf16.msra.mxu0 %v3161_v41  ;;  %3018 = vmatprep.mubr.msk.f32.mxu0 %vm3582_vm0, %v3583_v1 }
 0x45c   : > { %3163 = vmatprep.subr.bf16.mxu0 %v3581_v0  ;;  %3196 = vmatprep.subr.bf16.mxu1 %v3581_v0 }
 0x45d   : > { %3048 = vmatmul.mubr.msk.f32.vlgmr.msra.gmra.mrb[4].mxu1 %vm1949_vm5, %v2718_v51 }
 0x45e   : > { %3085 = vmatprep.mubr.msk.f32.mxu1 %vm3582_vm0, %v3583_v1  ;;  %3198 = vmatpush3.bf16.msra.mxu1 %v3197_v10 }
 0x45f   : > { %3165 = vmatpush3.bf16.msra.mxu0 %v3164_v44  ;;  %3199 = vmatprep.subr.bf16.mxu1 %v3581_v0  ;;  %v2521_v44 = vand.u32 127, %v2520_v43 }
 0x460   : > { %3166 = vmatprep.subr.bf16.mxu0 %v3581_v0 }
 0x461   : > { %vm2522_vm6 = vcmp.lt.s32.totalorder %v2521_v44, 4 }
 0x462   : > { %3201 = vmatpush3.bf16.msra.mxu1 %v3200_v12 }
 0x463   : > { %3168 = vmatpush3.bf16.msra.mxu0 %v3167_v47  ;;  %3202 = vmatprep.subr.bf16.mxu1 %v3581_v0 }
 0x464   : > { %3169 = vmatprep.subr.bf16.mxu0 %v3581_v0 }
 0x466   : > { %3204 = vmatpush3.bf16.msra.mxu1 %v3203_v15 }
 0x467   : > { %3171 = vmatpush3.bf16.msra.mxu0 %v3170_v50  ;;  %3205 = vmatprep.subr.bf16.mxu1 %v3581_v0 }
 0x468   : > { %3021 = vmatprep.subr.mxu0 %v3583_v1 }
 0x52d   : > { %v2023_v54 = vpop.f32.mrb[18].mxu0 }
 0x52e   : > { %3019 = vmatmul.mubr.msk.f32.vlgmr.msra.gmra.mrb[20].mxu0 %vm1549_vm3, %v2023_v54  ;;  %v3001_v55 = vpop.f32.mrb[19].mxu0 }
 0x52f   : > { %3022 = vmatpush3.msk.msra.mxu0 %vm1953_vm4, %v1946_v39  ;;  %3023 = vmatprep.mubr.msk.f32.mxu0 %vm3582_vm0, %v3583_v1 }
 0x530   : > { %3172 = vmatprep.subr.bf16.mxu0 %v3581_v0  ;;  %v2344_v5 = vpop.f32.mrb[4].mxu1 }
 0x531   : > { %v3049_v6 = vpop.f32.mrb[5].mxu1 }
 0x532   : > { %3024 = vmatmul.mubr.msk.f32.vlgmr.msra.gmra.mrb[22].mxu0 %vm1949_vm5, %v2714_v56 }
 0x533   : > { %3174 = vmatpush3.bf16.msra.mxu0 %v3173_v57  ;;  %3042 = vmatprep.mubr.msk.f32.mxu0 %vm3582_vm0, %v3583_v1 }
 0x534   : > { %3175 = vmatprep.subr.bf16.mxu0 %v3581_v0 }
 0x537   : > { %3177 = vmatpush3.bf16.msra.mxu0 %v3176_v60 }
 0x538   : > { %3178 = vmatprep.subr.bf16.mxu0 %v3581_v0 }
 0x53b   : > { %3180 = vmatpush3.bf16.msra.mxu0 %v3179_v63 }
 0x53c   : > { %3181 = vmatprep.subr.bf16.mxu0 %v3581_v0 }
 0x53f   : > { %3183 = vmatpush3.bf16.msra.mxu0 %v3182_v4 }
 0x540   : > { %3184 = vmatprep.subr.bf16.mxu0 %v3581_v0 }
 0x605   : > { %v2186_v21 = vpop.f32.mrb[22].mxu0 }
 0x606   : > { %3043 = vmatmul.mubr.msk.f32.vlgmr.msra.gmra.mrb[20].mxu0 %vm1549_vm3, %v2186_v21  ;;  %v3025_v22 = vpop.f32.mrb[23].mxu0 }
 0x607   : > { %3186 = vmatpush3.bf16.msra.mxu0 %v3185_v18  ;;  %3066 = vmatprep.mubr.msk.f32.mxu0 %vm3582_vm0, %v3583_v1  ;;  %v2438_v1 = vld [vmem:[%s4115_s12 + $0x30] sm:$0xff] }
 0x608   : > { %3187 = vmatprep.subr.bf16.mxu0 %v3581_v0  ;;  %v3206_v31 = vpack.c.bf16 %v2439_v30, %v2438_v1 }
 0x60a   : > { %3207 = vmatpush3.bf16.msra.mxu1 %v3206_v31 }
 0x60b   : > { %3189 = vmatpush3.bf16.msra.mxu0 %v3188_v23 }
 0x60c   : > { %3190 = vmatprep.subr.bf16.mxu0 %v3581_v0 }
 0x60f   : > { %3192 = vmatpush3.bf16.msra.mxu0 %v3191_v26 }
 0x610   : > { %3193 = vmatprep.subr.bf16.mxu0 %v3581_v0 }
 0x613   : > { %3195 = vmatpush3.bf16.msra.mxu0 %v3194_v29 }
 0x616   : > { %3067 = vmatmul.mubr.msk.f32.vlgmr.msra.gmra.mrb[20].mxu0 %vm1549_vm3, %v2344_v5 }
 0x6e9   : > { %v2426_v33 = vpop.f32.mrb[20].mxu0 }
 0x6ea   : > { %v3210_v0 = vadd.f32 %v2713_v32, %v2426_v33  ;;  %v3068_v34 = vpop.f32.mrb[21].mxu0 }
 0x6ec   : > { %v2431_v35 = vmax.f32 %v3210_v0, 0.0 }
 0x6ee   : > { %3086 = vmatmul.mubr.msk.f32.vlgmr.msra.gmra.mrb[6].mxu1 %vm1549_vm3, %v2431_v35 }
 0x7c1   : > { %v2516_v37 = vpop.f32.mrb[6].mxu1 }
 0x7c2   : > { %v2517_v38 = vadd.f32 %v2722_v36, %v2516_v37  ;;  %v3087_v39 = vpop.f32.mrb[7].mxu1 }
 0x7c4   : > { %v2724_v40 = vmul.f32 -1.442695, %v2517_v38 }
 0x7c6   : > { %3334 = vpow2.f32 %v2724_v40 }
 0x7d0   : > { %v3335_v41 = vpop.eup %3334 }
 0x7d1   : > { %v2526_v42 = vadd.f32 1.0, %v3335_v41 }
 0x7d3   : > { %3336 = vrcp.f32 %v2526_v42 }
 0x7dd   : > { %v3337_v45 = vpop.eup %3336 }
 0x7de   : > { %v2529_v46 = vsel %vm2522_vm6, %v3337_v45, %v2517_v38 }
 0x7df   : > { %2531 = vst.msk [vmem:[%s545_s15] sm:$0xf] %vm2530_vm7, %v2529_v46 }
 0x7e0   : > { %3506 = shalt.err (!%p3503_p1)
}
 0x7e1   : > { %s3507_s20 = scalar_lea.hbm %s4061_s25, 64  ;;  %s3511_s27 = scalar_lea.hbm %s4160_s14, 128 }
 0x7e2   : > { %p3508_p6 = scmp.ne.s32.totalorder %s4061_s25, %s3507_s20  ;;  %p3512_p2 = scmp.lt.u32.totalorder %s4061_s25, %s4160_s14 }
 0x7e3   : > { %p3513_p3 = scmp.lt.u32.totalorder %s3511_s27, %s3507_s20  ;;  %p3515_p7 = scmp.lt.u32.totalorder %s3507_s20, %s4061_s25 }
 0x7e4   : > { %p3509_p9 = pnand %p3508_p6, %p4161_p8 }
 0x7e5   : > { %p3514_p4 = por %p3513_p3, %p3512_p2 }
 0x7e6   : > { %p3510_p12 = pneg %p3509_p9 }
 0x7e7   : > { %p3516_p11 = por %p3515_p7, %p3514_p4 }
 0x7e9   : > { %p3517_p13 = pnand %p3516_p11, %p3510_p12 }
 0x7eb   : > { %3520 = shalt.err (!%p3517_p13)
}
 0x7ec   : > { %3253 = dma.vmem_to_hbm [thread:$0]  (%p4161_p8), %s4063_s22, 64, %s4061_s25, %s2533_s28  }
 0x7ed PF: > { %s4162_s15 = sld [smem:[#allocation21_spill]]  ;;  %s4163_s26 = sld [smem:[#allocation19_spill]] }
 0x7ee   : > { %s4164_s16 = sld [smem:[#allocation25_spill]] }
 0x7f3   : > { %p3290_p5 = scmp.ge.s32.totalorder %s4162_s15, 2  ;;  %s2558_s19 = sand.u32 1, %s4163_s26  }
 0x7f4   : > { %p4165_p0 = scmp.ne.s32.totalorder %s4164_s16, 0  ;;  %s2559_s17 = scalar_lea.sflag [#allocation4], %s2558_s19 }
 0x7f6   : > { %p3275_p10 = pnand %p3290_p5, %p4165_p0 }
 0x7f8   : > { %3554 = dma.done.wait (!%p3275_p10), %s2559_s17, 64  }
 0x7f9   : > { %3556 = vsyncadd (!%p3275_p10), %s2559_s17, 4294967232  ;;  %s4166_s16 = sld [smem:[#allocation22_spill]]  ;;  %s4167_s24 = sld [smem:[#allocation20_spill]] }
 0x7fa   : > { %s4168_s15 = sld [smem:[#allocation23_spill]]  ;;  %s4169_s29 = smov %s3563_s30 }
 0x7ff   : > { %p28_p1 = scmp.ge.s32.totalorder %s4166_s16, 4   ;;  %s4170_s30 = smov %s4167_s24 }
 0x801   :  { %30 = sbr.rel (!%p28_p1) target bundleno = 11 (0xb), region = 153 }
 0x808   :  { %2564 = vsyncpa [#allocation3], 1 }
 0x809   :  { %2566 = vsyncpa [#allocation3 + $0x1], 1 }
 0x80a   :  { %2567 = vsyncpa [#allocation8], 1 }
 0x80b   :  { %2568 = vsyncpa [#allocation11], 1 }
 0x80c   :  { %2569 = vsyncpa [#allocation4], 1 }
 0x80d   :  { %2571 = vsyncpa [#allocation4 + $0x1], 1 }
 0x80e   :  { %2572 = vsyncpa [#allocation5], 1 }
 0x80f   :  { %2574 = vsyncpa [#allocation5 + $0x1], 1 }

</bundles_post_ra>
